<compile_context>
chip_gen: v6e
topology: v6e:2x2x1
jax: 0.10.0
libtpu: 0.0.40
codegen_flags: <defaults>
</compile_context>

<pallas_src>
import jax
import jax.numpy as jnp
from jax.experimental import pallas as pl
from jax.experimental.pallas import tpu as pltpu


def _round_up(n, m):
    return ((n + m - 1) // m) * m


def _leaky_relu(x, slope=0.2):
    return jnp.where(x > 0, x, slope * x)


def discriminator_kernel(x_ref,
                         w1_ref, b1_ref,
                         w2_ref, b2_ref,
                         w3_ref, b3_ref,
                         w4_ref, b4_ref,
                         o_ref):
    """One batch tile of the fused 4-layer discriminator MLP.

    Weights are bf16 (MXU-native); activations, bias adds, LeakyReLU and
    Sigmoid are all f32.  Dropout(0.3) is eval-mode identity.
    """
    # Layer 1: image_dim_padded -> 1024  (cast activation to bf16 only at the MXU input)
    h = jnp.dot(x_ref[...].astype(jnp.bfloat16), w1_ref[...],
                preferred_element_type=jnp.float32) + b1_ref[...]
    h = _leaky_relu(h)
    # TODO(synk): training-mode stochastic Dropout(0.3) (pltpu.prng_*) not reproduced.

    # Layer 2: 1024 -> 512
    h = jnp.dot(h.astype(jnp.bfloat16), w2_ref[...],
                preferred_element_type=jnp.float32) + b2_ref[...]
    h = _leaky_relu(h)

    # Layer 3: 512 -> 256
    h = jnp.dot(h.astype(jnp.bfloat16), w3_ref[...],
                preferred_element_type=jnp.float32) + b3_ref[...]
    h = _leaky_relu(h)

    # Layer 4: 256 -> 1, zero-padded to 128 output lanes so the store is a
    # full, unmasked lane-dense vst (only column 0 carries the real logit).
    logits = jnp.dot(h.astype(jnp.bfloat16), w4_ref[...],
                     preferred_element_type=jnp.float32) + b4_ref[...]
    o_ref[...] = jax.nn.sigmoid(logits)


def init_params(key, image_dim):
    """PyTorch-style init: U(-1/sqrt(fan_in), 1/sqrt(fan_in)), f32.

    Weights are stored (in_features, out_features) so the kernel computes
    y = x @ W + b directly; biases are (1, out_features).
    """
    dims = [image_dim, 1024, 512, 256, 1]
    params = []
    for i in range(4):
        fan_in, fan_out = dims[i], dims[i + 1]
        key, kw, kb = jax.random.split(key, 3)
        bound = 1.0 / jnp.sqrt(float(fan_in))
        w = jax.random.uniform(kw, (fan_in, fan_out), jnp.float32, -bound, bound)
        b = jax.random.uniform(kb, (1, fan_out), jnp.float32, -bound, bound)
        params.append((w, b))
    return params


def prepare_params(params):
    """Pad + cast the f32 params once; reuse the returned bf16 copy across
    GAN steps so the prep cost / weight conversion is amortized."""
    (w1, b1), (w2, b2), (w3, b3), (w4, b4) = params

    # Pad layer-1 K (image_dim) up to a multiple of 128 with zero rows.
    k1 = w1.shape[0]
    k1p = _round_up(k1, 128)
    w1p = jnp.zeros((k1p, w1.shape[1]), jnp.float32).at[:k1, :].set(w1)

    # Pad the final (256, 1) layer out to 128 lanes (lane-dense output).
    w4p = jnp.zeros((w4.shape[0], 128), jnp.float32).at[:, :1].set(w4)
    b4p = jnp.zeros((1, 128), jnp.float32).at[:, :1].set(b4)

    weights_bf16 = tuple(w.astype(jnp.bfloat16) for w in (w1p, w2, w3, w4p))
    biases_f32 = (b1, b2, b3, b4p)
    return weights_bf16, biases_f32


def discriminator_forward(x, weights_bf16, biases_f32, *, tile_batch=256):
    """x: (B, image_dim) f32.  Returns (B, 1) f32 in [0, 1]."""
    w1, w2, w3, w4 = weights_bf16
    b1, b2, b3, b4 = biases_f32

    B, K = x.shape
    K1p = w1.shape[0]
    N_OUT = 128  # lane-dense padded output width

    # Batch tile: 256 fills the v6e/v7x MXU M dim; clamp for tiny batches.
    tb = min(tile_batch, _round_up(max(B, 1), 8))
    Bp = _round_up(B, tb)
    num_tiles = Bp // tb

    # Zero-pad batch rows and feature columns (numerically inert).
    xp = jnp.zeros((Bp, K1p), jnp.float32).at[:B, :K].set(x)

    flops = 2 * Bp * (K1p * 1024 + 1024 * 512 + 512 * 256 + 256 * 128)
    bytes_accessed = (xp.size * 4 + Bp * N_OUT * 4
                      + sum(w.size * 2 for w in weights_bf16)
                      + sum(b.size * 4 for b in biases_f32))

    out = pl.pallas_call(
        discriminator_kernel,
        out_shape=jax.ShapeDtypeStruct((Bp, N_OUT), jnp.float32),
        grid=(num_tiles,),
        in_specs=[
            # x: tiled along batch.
            pl.BlockSpec((tb, K1p), lambda i: (i, 0)),
            # Weights / biases: constant block index -> VMEM-resident across tiles.
            pl.BlockSpec(w1.shape, lambda i: (0, 0)),
            pl.BlockSpec(b1.shape, lambda i: (0, 0)),
            pl.BlockSpec(w2.shape, lambda i: (0, 0)),
            pl.BlockSpec(b2.shape, lambda i: (0, 0)),
            pl.BlockSpec(w3.shape, lambda i: (0, 0)),
            pl.BlockSpec(b3.shape, lambda i: (0, 0)),
            pl.BlockSpec(w4.shape, lambda i: (0, 0)),
            pl.BlockSpec(b4.shape, lambda i: (0, 0)),
        ],
        out_specs=pl.BlockSpec((tb, N_OUT), lambda i: (i, 0)),
        compiler_params=pltpu.CompilerParams(
            # Batch tiles are independent -> v7x shards them across its 2 TCs.
            dimension_semantics=("parallel",),
            vmem_limit_bytes=32 << 20,
        ),
        cost_estimate=pl.CostEstimate(
            flops=flops,
            transcendentals=Bp * N_OUT,
            bytes_accessed=bytes_accessed,
        ),
    )(xp, w1, b1, w2, b2, w3, b3, w4, b4)

    return out[:B, :1]


def reference_forward(x, params):
    """Pure-JAX f32 reference (eval-mode dropout = identity)."""
    h = x
    for i, (w, b) in enumerate(params):
        h = h @ w + b
        if i < 3:
            h = jnp.where(h > 0, h, 0.2 * h)
    return jax.nn.sigmoid(h)


if __name__ == "__main__":
    B, IMAGE_DIM = 8, 64

    key = jax.random.PRNGKey(0)
    key, kx = jax.random.split(key)
    x = jax.random.normal(kx, (B, IMAGE_DIM), dtype=jnp.float32)
    params = init_params(key, IMAGE_DIM)

    # Prepare (pad + bf16-cast) weights once; reuse across forward calls.
    weights_bf16, biases_f32 = prepare_params(params)

    out = discriminator_forward(x, weights_bf16, biases_f32)
    out = jax.block_until_ready(out)

    ref = reference_forward(x, params)
    assert out.shape == (B, 1), out.shape
    max_err = jnp.max(jnp.abs(out - ref))
    # bf16 weights -> loosened tolerance vs. f32 reference.
    assert max_err < 2e-2, f"max abs err {max_err}"

    print("KERNEL_OK")
</pallas_src>

<mosaic_0001>
module attributes {stable_mosaic.version = 11 : i64} {
  func.func @discriminator_kernel(%arg0: i32, %arg1: memref<8x128xf32, #tpu.memory_space<vmem>>, %arg2: memref<128x1024xbf16, #tpu.memory_space<vmem>>, %arg3: memref<1x1024xf32, #tpu.memory_space<vmem>>, %arg4: memref<1024x512xbf16, #tpu.memory_space<vmem>>, %arg5: memref<1x512xf32, #tpu.memory_space<vmem>>, %arg6: memref<512x256xbf16, #tpu.memory_space<vmem>>, %arg7: memref<1x256xf32, #tpu.memory_space<vmem>>, %arg8: memref<256x128xbf16, #tpu.memory_space<vmem>>, %arg9: memref<1x128xf32, #tpu.memory_space<vmem>>, %arg10: memref<8x128xf32, #tpu.memory_space<vmem>>) attributes {dimension_semantics = [#tpu.dimension_semantics<parallel>], iteration_bounds = array<i64: 1>, scalar_prefetch = 0 : i64, scratch_operands = 0 : i64, tpu.core_type = #tpu.core_type<tc>, window_params = [{transform_indices = @transform_0, window_bounds = array<i64: 8, 128>}, {pipeline_mode = #tpu.pipeline_mode<synchronous>, transform_indices = @transform_1, window_bounds = array<i64: 128, 1024>}, {pipeline_mode = #tpu.pipeline_mode<synchronous>, transform_indices = @transform_2, window_bounds = array<i64: 1, 1024>}, {pipeline_mode = #tpu.pipeline_mode<synchronous>, transform_indices = @transform_3, window_bounds = array<i64: 1024, 512>}, {pipeline_mode = #tpu.pipeline_mode<synchronous>, transform_indices = @transform_4, window_bounds = array<i64: 1, 512>}, {pipeline_mode = #tpu.pipeline_mode<synchronous>, transform_indices = @transform_5, window_bounds = array<i64: 512, 256>}, {pipeline_mode = #tpu.pipeline_mode<synchronous>, transform_indices = @transform_6, window_bounds = array<i64: 1, 256>}, {pipeline_mode = #tpu.pipeline_mode<synchronous>, transform_indices = @transform_7, window_bounds = array<i64: 256, 128>}, {pipeline_mode = #tpu.pipeline_mode<synchronous>, transform_indices = @transform_8, window_bounds = array<i64: 1, 128>}, {transform_indices = @transform_9, window_bounds = array<i64: 8, 128>}]} {
    %c0 = arith.constant 0 : index
    %c0_0 = arith.constant 0 : index
    %0 = vector.load %arg1[%c0, %c0_0] : memref<8x128xf32, #tpu.memory_space<vmem>>, vector<8x128xf32>
    %1 = arith.truncf %0 : vector<8x128xf32> to vector<8x128xbf16>
    %c0_1 = arith.constant 0 : index
    %c0_2 = arith.constant 0 : index
    %2 = vector.load %arg2[%c0_1, %c0_2] : memref<128x1024xbf16, #tpu.memory_space<vmem>>, vector<128x1024xbf16>
    %cst = arith.constant dense<0.000000e+00> : vector<8x1024xf32>
    %3 = tpu.matmul %1, %2, %cst {dimension_numbers = #tpu.dot_dimension_numbers<[1], [0], [0], [1], [0, 0, 1, 1], [], []>} : vector<8x128xbf16>, vector<128x1024xbf16>, vector<8x1024xf32> -> vector<8x1024xf32>
    %c0_3 = arith.constant 0 : index
    %c0_4 = arith.constant 0 : index
    %4 = vector.load %arg3[%c0_3, %c0_4] : memref<1x1024xf32, #tpu.memory_space<vmem>>, vector<1x1024xf32>
    %5 = vector.broadcast %4 : vector<1x1024xf32> to vector<8x1024xf32>
    %6 = arith.addf %3, %5 : vector<8x1024xf32>
    %cst_5 = arith.constant 0.000000e+00 : f32
    %7 = vector.broadcast %cst_5 : f32 to vector<8x1024xf32>
    %8 = arith.cmpf ogt, %6, %7 : vector<8x1024xf32>
    %cst_6 = arith.constant 2.000000e-01 : f32
    %9 = vector.broadcast %cst_6 : f32 to vector<8x1024xf32>
    %10 = arith.mulf %9, %6 : vector<8x1024xf32>
    %11 = arith.select %8, %6, %10 : vector<8x1024xi1>, vector<8x1024xf32>
    %12 = arith.truncf %11 : vector<8x1024xf32> to vector<8x1024xbf16>
    %c0_7 = arith.constant 0 : index
    %c0_8 = arith.constant 0 : index
    %13 = vector.load %arg4[%c0_7, %c0_8] : memref<1024x512xbf16, #tpu.memory_space<vmem>>, vector<1024x512xbf16>
    %cst_9 = arith.constant dense<0.000000e+00> : vector<8x512xf32>
    %14 = tpu.matmul %12, %13, %cst_9 {dimension_numbers = #tpu.dot_dimension_numbers<[1], [0], [0], [1], [0, 0, 1, 1], [], []>} : vector<8x1024xbf16>, vector<1024x512xbf16>, vector<8x512xf32> -> vector<8x512xf32>
    %c0_10 = arith.constant 0 : index
    %c0_11 = arith.constant 0 : index
    %15 = vector.load %arg5[%c0_10, %c0_11] : memref<1x512xf32, #tpu.memory_space<vmem>>, vector<1x512xf32>
    %16 = vector.broadcast %15 : vector<1x512xf32> to vector<8x512xf32>
    %17 = arith.addf %14, %16 : vector<8x512xf32>
    %cst_12 = arith.constant 0.000000e+00 : f32
    %18 = vector.broadcast %cst_12 : f32 to vector<8x512xf32>
    %19 = arith.cmpf ogt, %17, %18 : vector<8x512xf32>
    %cst_13 = arith.constant 2.000000e-01 : f32
    %20 = vector.broadcast %cst_13 : f32 to vector<8x512xf32>
    %21 = arith.mulf %20, %17 : vector<8x512xf32>
    %22 = arith.select %19, %17, %21 : vector<8x512xi1>, vector<8x512xf32>
    %23 = arith.truncf %22 : vector<8x512xf32> to vector<8x512xbf16>
    %c0_14 = arith.constant 0 : index
    %c0_15 = arith.constant 0 : index
    %24 = vector.load %arg6[%c0_14, %c0_15] : memref<512x256xbf16, #tpu.memory_space<vmem>>, vector<512x256xbf16>
    %cst_16 = arith.constant dense<0.000000e+00> : vector<8x256xf32>
    %25 = tpu.matmul %23, %24, %cst_16 {dimension_numbers = #tpu.dot_dimension_numbers<[1], [0], [0], [1], [0, 0, 1, 1], [], []>} : vector<8x512xbf16>, vector<512x256xbf16>, vector<8x256xf32> -> vector<8x256xf32>
    %c0_17 = arith.constant 0 : index
    %c0_18 = arith.constant 0 : index
    %26 = vector.load %arg7[%c0_17, %c0_18] : memref<1x256xf32, #tpu.memory_space<vmem>>, vector<1x256xf32>
    %27 = vector.broadcast %26 : vector<1x256xf32> to vector<8x256xf32>
    %28 = arith.addf %25, %27 : vector<8x256xf32>
    %cst_19 = arith.constant 0.000000e+00 : f32
    %29 = vector.broadcast %cst_19 : f32 to vector<8x256xf32>
    %30 = arith.cmpf ogt, %28, %29 : vector<8x256xf32>
    %cst_20 = arith.constant 2.000000e-01 : f32
    %31 = vector.broadcast %cst_20 : f32 to vector<8x256xf32>
    %32 = arith.mulf %31, %28 : vector<8x256xf32>
    %33 = arith.select %30, %28, %32 : vector<8x256xi1>, vector<8x256xf32>
    %34 = arith.truncf %33 : vector<8x256xf32> to vector<8x256xbf16>
    %c0_21 = arith.constant 0 : index
    %c0_22 = arith.constant 0 : index
    %35 = vector.load %arg8[%c0_21, %c0_22] : memref<256x128xbf16, #tpu.memory_space<vmem>>, vector<256x128xbf16>
    %cst_23 = arith.constant dense<0.000000e+00> : vector<8x128xf32>
    %36 = tpu.matmul %34, %35, %cst_23 {dimension_numbers = #tpu.dot_dimension_numbers<[1], [0], [0], [1], [0, 0, 1, 1], [], []>} : vector<8x256xbf16>, vector<256x128xbf16>, vector<8x128xf32> -> vector<8x128xf32>
    %c0_24 = arith.constant 0 : index
    %c0_25 = arith.constant 0 : index
    %37 = vector.load %arg9[%c0_24, %c0_25] : memref<1x128xf32, #tpu.memory_space<vmem>>, vector<1x128xf32>
    %38 = vector.broadcast %37 : vector<1x128xf32> to vector<8x128xf32>
    %39 = arith.addf %36, %38 : vector<8x128xf32>
    %40 = arith.negf %39 : vector<8x128xf32>
    %41 = math.exp %40 : vector<8x128xf32>
    %cst_26 = arith.constant 1.000000e+00 : f32
    %42 = vector.broadcast %cst_26 : f32 to vector<8x128xf32>
    %43 = arith.addf %42, %41 : vector<8x128xf32>
    %44 = arith.divf %42, %43 : vector<8x128xf32>
    %c0_27 = arith.constant 0 : index
    %c0_28 = arith.constant 0 : index
    %45 = vector.load %arg10[%c0_27, %c0_28] : memref<8x128xf32, #tpu.memory_space<vmem>>, vector<8x128xf32>
    tpu.vector_store %arg10[%c0_27, %c0_28], %44 {strides = array<i32>} : memref<8x128xf32, #tpu.memory_space<vmem>>, vector<8x128xf32>,
    return
  }
  func.func @transform_0(%arg0: i32) -> (i32, i32) {
    %c0_i32 = arith.constant 0 : i32
    %c0_i32_0 = arith.constant 0 : i32
    return %arg0, %c0_i32 : i32, i32
  }
  func.func @transform_1(%arg0: i32) -> (i32, i32) {
    %c0_i32 = arith.constant 0 : i32
    %c0_i32_0 = arith.constant 0 : i32
    %c0_i32_1 = arith.constant 0 : i32
    return %c0_i32, %c0_i32_0 : i32, i32
  }
  func.func @transform_2(%arg0: i32) -> (i32, i32) {
    %c0_i32 = arith.constant 0 : i32
    %c0_i32_0 = arith.constant 0 : i32
    %c0_i32_1 = arith.constant 0 : i32
    return %c0_i32, %c0_i32_0 : i32, i32
  }
  func.func @transform_3(%arg0: i32) -> (i32, i32) {
    %c0_i32 = arith.constant 0 : i32
    %c0_i32_0 = arith.constant 0 : i32
    %c0_i32_1 = arith.constant 0 : i32
    return %c0_i32, %c0_i32_0 : i32, i32
  }
  func.func @transform_4(%arg0: i32) -> (i32, i32) {
    %c0_i32 = arith.constant 0 : i32
    %c0_i32_0 = arith.constant 0 : i32
    %c0_i32_1 = arith.constant 0 : i32
    return %c0_i32, %c0_i32_0 : i32, i32
  }
  func.func @transform_5(%arg0: i32) -> (i32, i32) {
    %c0_i32 = arith.constant 0 : i32
    %c0_i32_0 = arith.constant 0 : i32
    %c0_i32_1 = arith.constant 0 : i32
    return %c0_i32, %c0_i32_0 : i32, i32
  }
  func.func @transform_6(%arg0: i32) -> (i32, i32) {
    %c0_i32 = arith.constant 0 : i32
    %c0_i32_0 = arith.constant 0 : i32
    %c0_i32_1 = arith.constant 0 : i32
    return %c0_i32, %c0_i32_0 : i32, i32
  }
  func.func @transform_7(%arg0: i32) -> (i32, i32) {
    %c0_i32 = arith.constant 0 : i32
    %c0_i32_0 = arith.constant 0 : i32
    %c0_i32_1 = arith.constant 0 : i32
    return %c0_i32, %c0_i32_0 : i32, i32
  }
  func.func @transform_8(%arg0: i32) -> (i32, i32) {
    %c0_i32 = arith.constant 0 : i32
    %c0_i32_0 = arith.constant 0 : i32
    %c0_i32_1 = arith.constant 0 : i32
    return %c0_i32, %c0_i32_0 : i32, i32
  }
  func.func @transform_9(%arg0: i32) -> (i32, i32) {
    %c0_i32 = arith.constant 0 : i32
    %c0_i32_0 = arith.constant 0 : i32
    return %arg0, %c0_i32 : i32, i32
  }
}

</mosaic_0001>

<bundles_post_ra>
// kernel: tpu_custom_call.1
= control target key start
LH: loop header
LB: loop body
LE: loop exit
PB: predicated region body
PF: predicated region fallthrough
CT: control target
= control target key end

     0   :  { %14 = vsyncpa [#allocation3], 0  ;;  %s4614_s0 = inlined_call_operand.hbm [shape: f32[8,128], index: 0, kind: input, shape index: {}]   ;;  %s4615_s1 = inlined_call_operand.hbm [shape: bf16[128,1024], index: 1, kind: input, shape index: {}]   ;;  %s4616_s2 = inlined_call_operand.hbm [shape: f32[1,1024], index: 2, kind: input, shape index: {}]   ;;  %s4617_s3 = inlined_call_operand.hbm [shape: bf16[1024,512], index: 3, kind: input, shape index: {}]   ;;  %s4618_s4 = inlined_call_operand.vmem [shape: f32[1,512], index: 4, kind: input, shape index: {}]   ;;  %s4619_s5 = inlined_call_operand.hbm [shape: bf16[512,256], index: 5, kind: input, shape index: {}]   ;;  %s4620_s6 = inlined_call_operand.vmem [shape: f32[1,256], index: 6, kind: input, shape index: {}]   ;;  %s4621_s7 = inlined_call_operand.hbm [shape: bf16[256,128], index: 7, kind: input, shape index: {}]   ;;  %s4622_s8 = inlined_call_operand.vmem [shape: f32[1,128], index: 8, kind: input, shape index: {}]   ;;  %s4623_s9 = inlined_call_operand.hbm [shape: f32[8,128], index: 9, kind: output, shape index: {}]  }
   0x1   :  { %15 = vsyncpa [#allocation6], 0 }
   0x2   :  { %16 = vsyncpa [#allocation9], 0 }
   0x3   :  { %17 = vsyncpa [#allocation12], 0 }
   0x4   :  { %18 = vsyncpa [#allocation4], 0  ;;  %s4414_s30 = smov [#allocation5]  }
   0x5   :  { %s34_s10 = sshll.u32 %s4414_s30, 4  ;;  %s35_s10 = int_to_ptr.vmem [resolvable:$true] %s34_s10 }
   0x6   :  { %s4272_s11 = scalar_lea.vmem %s35_s10, 8192  ;;  %p4277_p1 = scmp.lt.s32.totalorder %s35_s10, %s35_s10 }
   0x7   :  { %p4273_p0 = scmp.ne.s32.totalorder %s35_s10, %s4272_s11  ;;  %p4278_p2 = scmp.lt.s32.totalorder %s4272_s11, %s4272_s11 }
   0x9   :  { %p4279_p3 = por %p4278_p2, %p4277_p1 }
   0xb   :  { %p4280_p4 = pnand %p4279_p3, %p4273_p0 }
   0xd   :  { %4283 = shalt.err (!%p4280_p4)
}
   0xe   :  { %s4415_s12 = smov 512   ;;  %s4416_s13 = smov 32  }
   0xf   :  { %40 = dma.hbm_to_vmem [thread:$0]  %s4615_s1, 8192, %s35_s10, [#allocation6], %s4415_s12, %s4415_s12, %s4416_s13  }
  0x10   :  { %s4417_s16 = smov [#allocation8]  }
  0x11   :  { %s56_s17 = sshll.u32 %s4417_s16, 4  ;;  %s57_s17 = int_to_ptr.vmem [resolvable:$true] %s56_s17 }
  0x12   :  { %s4292_s18 = scalar_lea.vmem %s57_s17, 32768  ;;  %p4297_p6 = scmp.lt.s32.totalorder %s57_s17, %s57_s17 }
  0x13   :  { %p4293_p5 = scmp.ne.s32.totalorder %s57_s17, %s4292_s18  ;;  %p4298_p7 = scmp.lt.s32.totalorder %s4292_s18, %s4292_s18 }
  0x15   :  { %p4299_p8 = por %p4298_p7, %p4297_p6 }
  0x17   :  { %p4300_p9 = pnand %p4299_p8, %p4293_p5 }
  0x19   :  { %4303 = shalt.err (!%p4300_p9)
}
  0x1a   :  { %s4418_s19 = smov 256   ;;  %s4419_s20 = smov 16  }
  0x1b   :  { %62 = dma.hbm_to_vmem [thread:$0]  %s4617_s3, 32768, %s57_s17, [#allocation9], %s4418_s19, %s4418_s19, %s4419_s20  }
  0x1c   :  { %s4420_s23 = smov [#allocation2]   ;;  %s4421_s25 = smov [#allocation7]  }
  0x1d   :  { %s25_s24 = sshll.u32 %s4420_s23, 4  ;;  %s47_s1 = sshll.u32 %s4421_s25, 4  ;;  %s26_s24 = int_to_ptr.vmem [resolvable:$true] %s25_s24  ;;  %s48_s1 = int_to_ptr.vmem [resolvable:$true] %s47_s1 }
  0x1e   :  { %s4312_s26 = scalar_lea.vmem %s26_s24, 128  ;;  %p4317_p11 = scmp.lt.s32.totalorder %s26_s24, %s26_s24 }
  0x1f   :  { %p4313_p10 = scmp.ne.s32.totalorder %s26_s24, %s4312_s26  ;;  %p4318_p12 = scmp.lt.s32.totalorder %s4312_s26, %s4312_s26 }
  0x21   :  { %p4319_p13 = por %p4318_p12, %p4317_p11 }
  0x23   :  { %p4320_p0 = pnand %p4319_p13, %p4313_p10 }
  0x25   :  { %4323 = shalt.err (!%p4320_p0)
}
  0x26   :  { %28 = dma.hbm_to_vmem [thread:$0]  %s4614_s0, 128, %s26_s24, [#allocation3]  }
  0x27   :  { %s4332_s29 = scalar_lea.vmem %s48_s1, 128  ;;  %p4337_p2 = scmp.lt.s32.totalorder %s48_s1, %s48_s1 }
  0x28   :  { %p4333_p1 = scmp.ne.s32.totalorder %s48_s1, %s4332_s29  ;;  %p4338_p3 = scmp.lt.s32.totalorder %s4332_s29, %s4332_s29 }
  0x2a   :  { %p4339_p4 = por %p4338_p3, %p4337_p2 }
  0x2c   :  { %p4340_p5 = pnand %p4339_p4, %p4333_p1 }
  0x2e   :  { %4343 = shalt.err (!%p4340_p5)
}
  0x2f   :  { %50 = dma.hbm_to_vmem [thread:$0]  %s4616_s2, 128, %s48_s1, [#allocation6]  }
  0x30   :  { %s4422_s10 = smov [#allocation10]  }
  0x31   :  { %s70_s11 = sshll.u32 %s4422_s10, 4  ;;  %s71_s11 = int_to_ptr.vmem [resolvable:$true] %s70_s11 }
  0x32   :  { %s4352_s12 = scalar_lea.vmem %s71_s11, 8192  ;;  %p4357_p7 = scmp.lt.s32.totalorder %s71_s11, %s71_s11 }
  0x33   :  { %p4353_p6 = scmp.ne.s32.totalorder %s71_s11, %s4352_s12  ;;  %p4358_p8 = scmp.lt.s32.totalorder %s4352_s12, %s4352_s12 }
  0x35   :  { %p4359_p9 = por %p4358_p8, %p4357_p7 }
  0x37   :  { %p4360_p10 = pnand %p4359_p9, %p4353_p6 }
  0x39   :  { %4363 = shalt.err (!%p4360_p10)
}
  0x3a   :  { %s4423_s0 = smov 128   ;;  %s4424_s13 = smov 8  }
  0x3b   :  { %76 = dma.hbm_to_vmem [thread:$0]  %s4619_s5, 8192, %s71_s11, [#allocation9], %s4423_s0, %s4423_s0, %s4424_s13  }
  0x3c   :  { %s4425_s16 = smov [#allocation11]  }
  0x3d   :  { %s84_s17 = sshll.u32 %s4425_s16, 4  ;;  %s85_s17 = int_to_ptr.vmem [resolvable:$true] %s84_s17 }
  0x3e   :  { %s4372_s2 = scalar_lea.vmem %s85_s17, 2048  ;;  %p4377_p12 = scmp.lt.s32.totalorder %s85_s17, %s85_s17 }
  0x3f   :  { %p4373_p11 = scmp.ne.s32.totalorder %s85_s17, %s4372_s2  ;;  %p4378_p13 = scmp.lt.s32.totalorder %s4372_s2, %s4372_s2 }
  0x41   :  { %p4379_p0 = por %p4378_p13, %p4377_p12 }
  0x43   :  { %p4380_p1 = pnand %p4379_p0, %p4373_p11 }
  0x45   :  { %4383 = shalt.err (!%p4380_p1)
}
  0x46   :  { %s4426_s18 = smov 64   ;;  %s4427_s19 = smov 4  }
  0x47   :  { %90 = dma.hbm_to_vmem [thread:$0]  %s4621_s7, 2048, %s85_s17, [#allocation12], %s4426_s18, %s4426_s18, %s4427_s19  }
  0x48   :  { %4404 = dma.done.wait [#allocation3], 128  }
  0x49   :  { %4405 = vsyncadd [#allocation3], 4294967168 }
  0x4a   :  { %4406 = dma.done.wait [#allocation6], 8320  }
  0x4b   :  { %4407 = vsyncadd [#allocation6], 4294958976 }
  0x4c   :  { %4408 = dma.done.wait [#allocation9], 40960  }
  0x4d   :  { %4409 = vsyncadd [#allocation9], 4294926336 }
  0x4e   :  { %4410 = dma.done.wait [#allocation12], 2048  }
  0x4f   :  { %4411 = vsyncadd [#allocation12], 4294965248  ;;  %v4428_v0 = vmov 0   ;;  %v170_v1 = vld [vmem:[#allocation5 + $0x1c0] sm:$0xff]  ;;  %v171_v3 = vld [vmem:[#allocation5 + $0x1c8] sm:$0xff]  ;;  %s4429_s24 = smov [#allocation13]  }
  0x50   :  { %572 = vmatprep.mubr.bf16.mxu0 %v4428_v0  ;;  %613 = vmatprep.mubr.bf16.mxu1 %v4428_v0  ;;  %v174_v2 = vld [vmem:[#allocation5 + $0x1e0] sm:$0xff]  ;;  %v175_v5 = vld [vmem:[#allocation5 + $0x1e8] sm:$0xff]  ;;  %v172_v62 = vld [vmem:[#allocation5 + $0x1d0] sm:$0xff]  ;;  %s3312_s25 = sshll.u32 %s4429_s24, 4  ;;  %s3313_s25 = int_to_ptr.vmem [resolvable:$true] %s3312_s25 }
  0x51   :  { %v3381_v4 = vcombine.high %v170_v1, %v174_v2  ;;  %v3380_v6 = vcombine.low %v170_v1, %v174_v2  ;;  %v162_v7 = vld [vmem:[#allocation5 + $0x180] sm:$0xff]  ;;  %v3383_v9 = vcombine.high %v171_v3, %v175_v5  ;;  %v3382_v10 = vcombine.low %v171_v3, %v175_v5  ;;  %v163_v12 = vld [vmem:[#allocation5 + $0x188] sm:$0xff]  ;;  %v176_v1 = vld [vmem:[#allocation5 + $0x1f0] sm:$0xff]  ;;  %s4384_s1 = scalar_lea.vmem %s3313_s25, 128  ;;  %p4389_p3 = scmp.lt.s32.totalorder %s3313_s25, %s3313_s25 }
  0x52   :  { %v166_v8 = vld [vmem:[#allocation5 + $0x1a0] sm:$0xff]  ;;  %v167_v13 = vld [vmem:[#allocation5 + $0x1a8] sm:$0xff]  ;;  %v173_v2 = vld [vmem:[#allocation5 + $0x1d8] sm:$0xff]  ;;  %p4385_p2 = scmp.ne.s32.totalorder %s3313_s25, %s4384_s1  ;;  %p4390_p4 = scmp.lt.s32.totalorder %s4384_s1, %s4384_s1 }
  0x53   :  { %v3373_v11 = vcombine.high %v162_v7, %v166_v8  ;;  %v154_v14 = vld [vmem:[#allocation5 + $0x140] sm:$0xff]  ;;  %540 = vmatprep.subr.bf16.mxu0 %v3381_v4  ;;  %v3375_v15 = vcombine.high %v163_v12, %v167_v13  ;;  %v155_v17 = vld [vmem:[#allocation5 + $0x148] sm:$0xff]  ;;  %581 = vmatprep.subr.bf16.mxu1 %v3383_v9  ;;  %v3372_v19 = vcombine.low %v162_v7, %v166_v8  ;;  %v177_v3 = vld [vmem:[#allocation5 + $0x1f8] sm:$0xff] }
  0x54   :  { %v158_v16 = vld [vmem:[#allocation5 + $0x160] sm:$0xff]  ;;  %v159_v18 = vld [vmem:[#allocation5 + $0x168] sm:$0xff]  ;;  %541 = vmatpush1.bf16.msra.mxu0 %v3380_v6  ;;  %582 = vmatpush1.bf16.msra.mxu1 %v3382_v10  ;;  %v3374_v20 = vcombine.low %v163_v12, %v167_v13  ;;  %v112_v5 = vld [vmem:[#allocation2] sm:$0xff]  ;;  %v3385_v7 = vcombine.high %v172_v62, %v176_v1  ;;  %v3387_v9 = vcombine.high %v173_v2, %v177_v3  ;;  %p4391_p5 = por %p4390_p4, %p4389_p3 }
  0x55   :  { %542 = vmatprep.subr.bf16.mxu0 %v3373_v11  ;;  %v3365_v21 = vcombine.high %v154_v14, %v158_v16  ;;  %583 = vmatprep.subr.bf16.mxu1 %v3375_v15  ;;  %v3367_v22 = vcombine.high %v155_v17, %v159_v18  ;;  %v146_v23 = vld [vmem:[#allocation5 + $0x100] sm:$0xff]  ;;  %v147_v25 = vld [vmem:[#allocation5 + $0x108] sm:$0xff]  ;;  %v3364_v27 = vcombine.low %v154_v14, %v158_v16  ;;  %v164_v8 = vld [vmem:[#allocation5 + $0x190] sm:$0xff] }
  0x56   :  { %v150_v24 = vld [vmem:[#allocation5 + $0x120] sm:$0xff]  ;;  %v151_v26 = vld [vmem:[#allocation5 + $0x128] sm:$0xff]  ;;  %v3366_v28 = vcombine.low %v155_v17, %v159_v18  ;;  %v168_v10 = vld [vmem:[#allocation5 + $0x1b0] sm:$0xff]  ;;  %v4500_v12 = vpack.c.bf16 %v112_v5, %v112_v5  ;;  %v3384_v14 = vcombine.low %v172_v62, %v176_v1  ;;  %v3386_v15 = vcombine.low %v173_v2, %v177_v3  ;;  %p4392_p6 = pnand %p4391_p5, %p4385_p2 }
  0x57   :  { %v3357_v29 = vcombine.high %v146_v23, %v150_v24  ;;  %v3359_v30 = vcombine.high %v147_v25, %v151_v26  ;;  %v138_v31 = vld [vmem:[#allocation5 + $0xc0] sm:$0xff]  ;;  %v139_v33 = vld [vmem:[#allocation5 + $0xc8] sm:$0xff]  ;;  %v3356_v35 = vcombine.low %v146_v23, %v150_v24  ;;  %v3358_v36 = vcombine.low %v147_v25, %v151_v26  ;;  %v165_v11 = vld [vmem:[#allocation5 + $0x198] sm:$0xff] }
  0x58   :  { %543 = vmatpush1.bf16.msra.mxu0 %v3372_v19  ;;  %584 = vmatpush1.bf16.msra.mxu1 %v3374_v20  ;;  %v142_v32 = vld [vmem:[#allocation5 + $0xe0] sm:$0xff]  ;;  %v143_v34 = vld [vmem:[#allocation5 + $0xe8] sm:$0xff]  ;;  %v169_v13 = vld [vmem:[#allocation5 + $0x1b8] sm:$0xff]  ;;  %v3377_v16 = vcombine.high %v164_v8, %v168_v10 }
  0x59   :  { %544 = vmatprep.subr.bf16.mxu0 %v3365_v21  ;;  %585 = vmatprep.subr.bf16.mxu1 %v3367_v22  ;;  %v3349_v37 = vcombine.high %v138_v31, %v142_v32  ;;  %v3351_v38 = vcombine.high %v139_v33, %v143_v34  ;;  %v130_v39 = vld [vmem:[#allocation5 + $0x80] sm:$0xff]  ;;  %v131_v41 = vld [vmem:[#allocation5 + $0x88] sm:$0xff]  ;;  %v3348_v43 = vcombine.low %v138_v31, %v142_v32  ;;  %v156_v17 = vld [vmem:[#allocation5 + $0x150] sm:$0xff] }
  0x5a   :  { %v134_v40 = vld [vmem:[#allocation5 + $0xa0] sm:$0xff]  ;;  %v135_v42 = vld [vmem:[#allocation5 + $0xa8] sm:$0xff]  ;;  %v3350_v44 = vcombine.low %v139_v33, %v143_v34  ;;  %v3379_v18 = vcombine.high %v165_v11, %v169_v13  ;;  %v160_v19 = vld [vmem:[#allocation5 + $0x170] sm:$0xff]  ;;  %v3376_v22 = vcombine.low %v164_v8, %v168_v10  ;;  %v3378_v23 = vcombine.low %v165_v11, %v169_v13 }
  0x5b   :  { %v3341_v45 = vcombine.high %v130_v39, %v134_v40  ;;  %v3343_v46 = vcombine.high %v131_v41, %v135_v42  ;;  %v122_v47 = vld [vmem:[#allocation5 + $0x40] sm:$0xff]  ;;  %v123_v49 = vld [vmem:[#allocation5 + $0x48] sm:$0xff]  ;;  %v3340_v51 = vcombine.low %v130_v39, %v134_v40  ;;  %v3342_v52 = vcombine.low %v131_v41, %v135_v42  ;;  %v157_v20 = vld [vmem:[#allocation5 + $0x158] sm:$0xff] }
  0x5c   :  { %545 = vmatpush1.bf16.msra.mxu0 %v3364_v27  ;;  %586 = vmatpush1.bf16.msra.mxu1 %v3366_v28  ;;  %v126_v48 = vld [vmem:[#allocation5 + $0x60] sm:$0xff]  ;;  %v127_v50 = vld [vmem:[#allocation5 + $0x68] sm:$0xff]  ;;  %v161_v21 = vld [vmem:[#allocation5 + $0x178] sm:$0xff]  ;;  %v3369_v24 = vcombine.high %v156_v17, %v160_v19 }
  0x5d   :  { %546 = vmatprep.subr.bf16.mxu0 %v3357_v29  ;;  %587 = vmatprep.subr.bf16.mxu1 %v3359_v30  ;;  %v3333_v53 = vcombine.high %v122_v47, %v126_v48  ;;  %v114_v54 = vld [vmem:[#allocation5] sm:$0xff]  ;;  %v3335_v55 = vcombine.high %v123_v49, %v127_v50  ;;  %v115_v57 = vld [vmem:[#allocation5 + $0x8] sm:$0xff]  ;;  %v3332_v59 = vcombine.low %v122_v47, %v126_v48  ;;  %v148_v25 = vld [vmem:[#allocation5 + $0x110] sm:$0xff] }
  0x5e   :  { %v118_v56 = vld [vmem:[#allocation5 + $0x20] sm:$0xff]  ;;  %v119_v58 = vld [vmem:[#allocation5 + $0x28] sm:$0xff]  ;;  %v3334_v60 = vcombine.low %v123_v49, %v127_v50  ;;  %v3371_v26 = vcombine.high %v157_v20, %v161_v21  ;;  %v152_v27 = vld [vmem:[#allocation5 + $0x130] sm:$0xff]  ;;  %v3368_v30 = vcombine.low %v156_v17, %v160_v19  ;;  %v3370_v31 = vcombine.low %v157_v20, %v161_v21 }
  0x5f   :  { %v3325_v61 = vcombine.high %v114_v54, %v118_v56  ;;  %v3327_v63 = vcombine.high %v115_v57, %v119_v58  ;;  %v3324_v4 = vcombine.low %v114_v54, %v118_v56  ;;  %v3326_v6 = vcombine.low %v115_v57, %v119_v58  ;;  %v149_v28 = vld [vmem:[#allocation5 + $0x118] sm:$0xff]  ;;  %v140_v33 = vld [vmem:[#allocation5 + $0xd0] sm:$0xff] }
  0x60   :  { %547 = vmatpush1.bf16.msra.mxu0 %v3356_v35  ;;  %588 = vmatpush1.bf16.msra.mxu1 %v3358_v36  ;;  %v153_v29 = vld [vmem:[#allocation5 + $0x138] sm:$0xff]  ;;  %v3361_v32 = vcombine.high %v148_v25, %v152_v27  ;;  %v144_v35 = vld [vmem:[#allocation5 + $0xf0] sm:$0xff] }
  0x61   :  { %548 = vmatprep.subr.bf16.mxu0 %v3349_v37  ;;  %589 = vmatprep.subr.bf16.mxu1 %v3351_v38  ;;  %v3363_v34 = vcombine.high %v149_v28, %v153_v29  ;;  %v141_v36 = vld [vmem:[#allocation5 + $0xd8] sm:$0xff]  ;;  %v3360_v38 = vcombine.low %v148_v25, %v152_v27  ;;  %v3362_v39 = vcombine.low %v149_v28, %v153_v29  ;;  %v132_v41 = vld [vmem:[#allocation5 + $0x90] sm:$0xff] }
  0x62   :  { %v145_v37 = vld [vmem:[#allocation5 + $0xf8] sm:$0xff]  ;;  %v3353_v40 = vcombine.high %v140_v33, %v144_v35  ;;  %v136_v42 = vld [vmem:[#allocation5 + $0xb0] sm:$0xff] }
  0x63   :  { %v3345_v47 = vcombine.high %v132_v41, %v136_v42  ;;  %v124_v48 = vld [vmem:[#allocation5 + $0x50] sm:$0xff]  ;;  %v3766_v2 = vld [vmem:[#allocation8 + $0xe4] ss:$16 sps:$4 sm:$0xff]   ;;  %v3770_v10 = vld [vmem:[#allocation8 + $0xc0] ss:$16 sps:$4 sm:$0xff]  }
  0x64   :  { %549 = vmatpush1.bf16.msra.mxu0 %v3348_v43  ;;  %590 = vmatpush1.bf16.msra.mxu1 %v3350_v44  ;;  %v133_v43 = vld [vmem:[#allocation5 + $0x98] sm:$0xff]  ;;  %v128_v50 = vld [vmem:[#allocation5 + $0x70] sm:$0xff] }
  0x65   :  { %550 = vmatprep.subr.bf16.mxu0 %v3341_v45  ;;  %591 = vmatprep.subr.bf16.mxu1 %v3343_v46  ;;  %v137_v44 = vld [vmem:[#allocation5 + $0xb8] sm:$0xff]  ;;  %v3352_v45 = vcombine.low %v140_v33, %v144_v35  ;;  %v3354_v46 = vcombine.low %v141_v36, %v145_v37  ;;  %v116_v56 = vld [vmem:[#allocation5 + $0x10] sm:$0xff] }
  0x66   :  { %v3347_v49 = vcombine.high %v133_v43, %v137_v44  ;;  %v3346_v54 = vcombine.low %v133_v43, %v137_v44  ;;  %v120_v58 = vld [vmem:[#allocation5 + $0x30] sm:$0xff]  ;;  %v3772_v8 = vld [vmem:[#allocation8 + $0xc4] ss:$16 sps:$4 sm:$0xff]   ;;  %v3773_v11 = vld [vmem:[#allocation8 + $0x2c0] ss:$16 sps:$4 sm:$0xff]  }
  0x67   :  { %v3328_v3 = vcombine.low %v116_v56, %v120_v58  ;;  %v3778_v13 = vld [vmem:[#allocation8 + $0xa4] ss:$16 sps:$4 sm:$0xff]   ;;  %v3782_v19 = vld [vmem:[#allocation8 + $0x80] ss:$16 sps:$4 sm:$0xff]  }
  0x68   :  { %551 = vmatpush1.bf16.msra.mxu0 %v3340_v51  ;;  %592 = vmatpush1.bf16.msra.mxu1 %v3342_v52  ;;  %v125_v51 = vld [vmem:[#allocation5 + $0x58] sm:$0xff] }
  0x69   :  { %552 = vmatprep.subr.bf16.mxu0 %v3333_v53  ;;  %593 = vmatprep.subr.bf16.mxu1 %v3335_v55  ;;  %v129_v52 = vld [vmem:[#allocation5 + $0x78] sm:$0xff]  ;;  %v3344_v53 = vcombine.low %v132_v41, %v136_v42  ;;  %v3337_v55 = vcombine.high %v124_v48, %v128_v50 }
  0x6a   :  { %v3339_v57 = vcombine.high %v125_v51, %v129_v52  ;;  %v3338_v62 = vcombine.low %v125_v51, %v129_v52  ;;  %v3784_v17 = vld [vmem:[#allocation8 + $0x84] ss:$16 sps:$4 sm:$0xff]   ;;  %v3785_v20 = vld [vmem:[#allocation8 + $0x280] ss:$16 sps:$4 sm:$0xff]  }
  0x6b   :  { %v3790_v21 = vld [vmem:[#allocation8 + $0x64] ss:$16 sps:$4 sm:$0xff]   ;;  %v3797_v27 = vld [vmem:[#allocation8 + $0x240] ss:$16 sps:$4 sm:$0xff]  }
  0x6c   :  { %553 = vmatpush1.bf16.msra.mxu0 %v3332_v59  ;;  %594 = vmatpush1.bf16.msra.mxu1 %v3334_v60  ;;  %v117_v59 = vld [vmem:[#allocation5 + $0x18] sm:$0xff] }
  0x6d   :  { %554 = vmatprep.subr.bf16.mxu0 %v3325_v61  ;;  %595 = vmatprep.subr.bf16.mxu1 %v3327_v63  ;;  %v121_v60 = vld [vmem:[#allocation5 + $0x38] sm:$0xff]  ;;  %v3336_v61 = vcombine.low %v124_v48, %v128_v50  ;;  %v3329_v63 = vcombine.high %v116_v56, %v120_v58 }
  0x6e   :  { %v3331_v1 = vcombine.high %v117_v59, %v121_v60  ;;  %v3330_v5 = vcombine.low %v117_v59, %v121_v60  ;;  %v3799_v25 = vld [vmem:[#allocation8 + $0x244] ss:$16 sps:$4 sm:$0xff]   ;;  %v3809_v35 = vld [vmem:[#allocation8 + $0x200] ss:$16 sps:$4 sm:$0xff]  }
  0x6f   :  { %v3802_v28 = vld [vmem:[#allocation8 + $0x24] ss:$16 sps:$4 sm:$0xff]   ;;  %v3821_v42 = vld [vmem:[#allocation8 + $0x3c0] ss:$16 sps:$4 sm:$0xff]  }
  0x70   :  { %555 = vmatpush1.bf16.msra.mxu0 %v3324_v4  ;;  %596 = vmatpush1.bf16.msra.mxu1 %v3326_v6  ;;  %v3769_v4 = vld [vmem:[#allocation8 + $0x2e4] ss:$16 sps:$4 sm:$0xff]   ;;  %v3764_v6 = vld [vmem:[#allocation8 + $0xe0] ss:$16 sps:$4 sm:$0xff]  }
  0x71   :  { %622 = vmatprep.subr.bf16.mxu0 %v3385_v7  ;;  %663 = vmatprep.subr.bf16.mxu1 %v3387_v9  ;;  %v3767_v7 = vld [vmem:[#allocation8 + $0x2e0] ss:$16 sps:$4 sm:$0xff]   ;;  %v3775_v9 = vld [vmem:[#allocation8 + $0x2c4] ss:$16 sps:$4 sm:$0xff]  }
  0x72   :  { %v3805_v29 = vld [vmem:[#allocation8 + $0x224] ss:$16 sps:$4 sm:$0xff]   ;;  %v3833_v50 = vld [vmem:[#allocation8 + $0x380] ss:$16 sps:$4 sm:$0xff]  }
  0x73   :  { %573 = vmatmul.mubr.bf16.vlgmr.msra.gmra.mxu0 %v4500_v12  ;;  %614 = vmatmul.mubr.bf16.vlgmr.msra.gmra.mxu1 %v4500_v12  ;;  %v3811_v33 = vld [vmem:[#allocation8 + $0x204] ss:$16 sps:$4 sm:$0xff]   ;;  %v3845_v58 = vld [vmem:[#allocation8 + $0x340] ss:$16 sps:$4 sm:$0xff]  }
  0x74   :  { %623 = vmatpush1.bf16.msra.mxu0 %v3384_v14  ;;  %664 = vmatpush1.bf16.msra.mxu1 %v3386_v15  ;;  %v3781_v14 = vld [vmem:[#allocation8 + $0x2a4] ss:$16 sps:$4 sm:$0xff]   ;;  %v3776_v15 = vld [vmem:[#allocation8 + $0xa0] ss:$16 sps:$4 sm:$0xff]  }
  0x75   :  { %624 = vmatprep.subr.bf16.mxu0 %v3377_v16  ;;  %665 = vmatprep.subr.bf16.mxu1 %v3379_v18  ;;  %v3779_v16 = vld [vmem:[#allocation8 + $0x2a0] ss:$16 sps:$4 sm:$0xff]   ;;  %v3787_v18 = vld [vmem:[#allocation8 + $0x284] ss:$16 sps:$4 sm:$0xff]  }
  0x76   :  { %654 = vmatprep.mubr.bf16.mxu0 %v4428_v0  ;;  %695 = vmatprep.mubr.bf16.mxu1 %v4428_v0  ;;  %v3355_v0 = vcombine.high %v141_v36, %v145_v37  ;;  %v3814_v36 = vld [vmem:[#allocation8 + $0x1e4] ss:$16 sps:$4 sm:$0xff]  }
  0x77   :  { %v3817_v37 = vld [vmem:[#allocation8 + $0x3e4] ss:$16 sps:$4 sm:$0xff]  }
  0x78   :  { %625 = vmatpush1.bf16.msra.mxu0 %v3376_v22  ;;  %666 = vmatpush1.bf16.msra.mxu1 %v3378_v23  ;;  %v3793_v22 = vld [vmem:[#allocation8 + $0x264] ss:$16 sps:$4 sm:$0xff]   ;;  %v3791_v23 = vld [vmem:[#allocation8 + $0x260] ss:$16 sps:$4 sm:$0xff]  }
  0x79   :  { %626 = vmatprep.subr.bf16.mxu0 %v3369_v24  ;;  %667 = vmatprep.subr.bf16.mxu1 %v3371_v26  ;;  %v3796_v24 = vld [vmem:[#allocation8 + $0x44] ss:$16 sps:$4 sm:$0xff]   ;;  %v3794_v26 = vld [vmem:[#allocation8 + $0x40] ss:$16 sps:$4 sm:$0xff]  }
  0x7a   :  { %v3823_v41 = vld [vmem:[#allocation8 + $0x3c4] ss:$16 sps:$4 sm:$0xff]  }
  0x7b   :  { %v3826_v43 = vld [vmem:[#allocation8 + $0x1a4] ss:$16 sps:$4 sm:$0xff]  }
  0x7c   :  { %627 = vmatpush1.bf16.msra.mxu0 %v3368_v30  ;;  %668 = vmatpush1.bf16.msra.mxu1 %v3370_v31  ;;  %v3800_v30 = vld [vmem:[#allocation8 + $0x20] ss:$16 sps:$4 sm:$0xff]   ;;  %v3829_v44 = vld [vmem:[#allocation8 + $0x3a4] ss:$16 sps:$4 sm:$0xff]  }
  0x7d   :  { %628 = vmatprep.subr.bf16.mxu0 %v3361_v32  ;;  %669 = vmatprep.subr.bf16.mxu1 %v3363_v34  ;;  %v3803_v31 = vld [vmem:[#allocation8 + $0x220] ss:$16 sps:$4 sm:$0xff]   ;;  %v3808_v32 = vld [vmem:[#allocation8 + $0x4] ss:$16 sps:$4 sm:$0xff]  }
  0x7e   :  { %v3806_v34 = vld [vmem:[#allocation8] ss:$16 sps:$4 sm:$0xff]   ;;  %v3835_v48 = vld [vmem:[#allocation8 + $0x384] ss:$16 sps:$4 sm:$0xff]  }
  0x7f   :  { %v3838_v51 = vld [vmem:[#allocation8 + $0x164] ss:$16 sps:$4 sm:$0xff]  }
  0x80   :  { %629 = vmatpush1.bf16.msra.mxu0 %v3360_v38  ;;  %670 = vmatpush1.bf16.msra.mxu1 %v3362_v39  ;;  %v3812_v38 = vld [vmem:[#allocation8 + $0x1e0] ss:$16 sps:$4 sm:$0xff]   ;;  %v3841_v52 = vld [vmem:[#allocation8 + $0x364] ss:$16 sps:$4 sm:$0xff]  }
  0x81   :  { %630 = vmatprep.subr.bf16.mxu0 %v3353_v40  ;;  %671 = vmatprep.subr.bf16.mxu1 %v3355_v0  ;;  %v3815_v39 = vld [vmem:[#allocation8 + $0x3e0] ss:$16 sps:$4 sm:$0xff]   ;;  %v3820_v40 = vld [vmem:[#allocation8 + $0x1c4] ss:$16 sps:$4 sm:$0xff]  }
  0x82   :  { %v3818_v0 = vld [vmem:[#allocation8 + $0x1c0] ss:$16 sps:$4 sm:$0xff]   ;;  %v3847_v56 = vld [vmem:[#allocation8 + $0x344] ss:$16 sps:$4 sm:$0xff]  }
  0x83   :  { %v3850_v59 = vld [vmem:[#allocation8 + $0x124] ss:$16 sps:$4 sm:$0xff]  }
  0x84   :  { %631 = vmatpush1.bf16.msra.mxu0 %v3352_v45  ;;  %672 = vmatpush1.bf16.msra.mxu1 %v3354_v46  ;;  %v3824_v45 = vld [vmem:[#allocation8 + $0x1a0] ss:$16 sps:$4 sm:$0xff]   ;;  %v3853_v60 = vld [vmem:[#allocation8 + $0x324] ss:$16 sps:$4 sm:$0xff]  }
  0x85   :  { %632 = vmatprep.subr.bf16.mxu0 %v3345_v47  ;;  %673 = vmatprep.subr.bf16.mxu1 %v3347_v49  ;;  %v3827_v46 = vld [vmem:[#allocation8 + $0x3a0] ss:$16 sps:$4 sm:$0xff]   ;;  %v3832_v47 = vld [vmem:[#allocation8 + $0x184] ss:$16 sps:$4 sm:$0xff]  }
  0x86   :  { %v3830_v49 = vld [vmem:[#allocation8 + $0x180] ss:$16 sps:$4 sm:$0xff]  }
  0x88   :  { %633 = vmatpush1.bf16.msra.mxu0 %v3344_v53  ;;  %674 = vmatpush1.bf16.msra.mxu1 %v3346_v54  ;;  %v3836_v53 = vld [vmem:[#allocation8 + $0x160] ss:$16 sps:$4 sm:$0xff]  }
  0x89   :  { %634 = vmatprep.subr.bf16.mxu0 %v3337_v55  ;;  %675 = vmatprep.subr.bf16.mxu1 %v3339_v57  ;;  %v3839_v54 = vld [vmem:[#allocation8 + $0x360] ss:$16 sps:$4 sm:$0xff]   ;;  %v3844_v55 = vld [vmem:[#allocation8 + $0x144] ss:$16 sps:$4 sm:$0xff]  }
  0x8a   :  { %v3842_v57 = vld [vmem:[#allocation8 + $0x140] ss:$16 sps:$4 sm:$0xff]  }
  0x8c   :  { %635 = vmatpush1.bf16.msra.mxu0 %v3336_v61  ;;  %676 = vmatpush1.bf16.msra.mxu1 %v3338_v62  ;;  %v3848_v61 = vld [vmem:[#allocation8 + $0x120] ss:$16 sps:$4 sm:$0xff]  }
  0x8d   :  { %636 = vmatprep.subr.bf16.mxu0 %v3329_v63  ;;  %677 = vmatprep.subr.bf16.mxu1 %v3331_v1  ;;  %v3851_v62 = vld [vmem:[#allocation8 + $0x320] ss:$16 sps:$4 sm:$0xff]   ;;  %v3856_v63 = vld [vmem:[#allocation8 + $0x104] ss:$16 sps:$4 sm:$0xff]  }
  0x8e   :  { %v3859_v1 = vld [vmem:[#allocation8 + $0x304] ss:$16 sps:$4 sm:$0xff]  }
  0x90   :  { %637 = vmatpush1.bf16.msra.mxu0 %v3328_v3  ;;  %678 = vmatpush1.bf16.msra.mxu1 %v3330_v5  ;;  %v3857_v3 = vld [vmem:[#allocation8 + $0x300] ss:$16 sps:$4 sm:$0xff]   ;;  %v3865_v5 = vld [vmem:[#allocation8 + $0x6e4] ss:$16 sps:$4 sm:$0xff]  }
  0x91   :  { %2294 = vmatprep.subr.bf16.mxu0 %v3766_v2  ;;  %2335 = vmatprep.subr.bf16.mxu1 %v3769_v4  ;;  %v3854_v2 = vld [vmem:[#allocation8 + $0x100] ss:$16 sps:$4 sm:$0xff]   ;;  %v3862_v4 = vld [vmem:[#allocation8 + $0x4e4] ss:$16 sps:$4 sm:$0xff]  }
  0x93   :  { %655 = vmatmul.mubr.bf16.vlgmr.msra.gmra.mxu0 %v4500_v12  ;;  %696 = vmatmul.mubr.bf16.vlgmr.msra.gmra.mxu1 %v4500_v12  ;;  %v3788_v12 = vld [vmem:[#allocation8 + $0x60] ss:$16 sps:$4 sm:$0xff]  }
  0x94   :  { %2295 = vmatpush1.bf16.msra.mxu0 %v3764_v6  ;;  %2336 = vmatpush1.bf16.msra.mxu1 %v3767_v7  ;;  %v180_v6 = vlaneseq }
  0x95   :  { %2296 = vmatprep.subr.bf16.mxu0 %v3772_v8  ;;  %2337 = vmatprep.subr.bf16.mxu1 %v3775_v9  ;;  %v4513_v9 = vld [vmem:[#allocation7] sm:$0xff] }
  0x96   :  { %v4508_v7 = vshrl.u32 %v180_v6, 7 }
  0x98   :  { %2297 = vmatpush1.bf16.msra.mxu0 %v3770_v10  ;;  %2338 = vmatpush1.bf16.msra.mxu1 %v3773_v11  ;;  %v4511_v8 = vsub.s32 0, %v4508_v7  ;;  %v190_v10 = vsub.s32 2, %v4508_v7  ;;  %v4517_v11 = vsub.s32 1, %v4508_v7 }
  0x99   :  { %2298 = vmatprep.subr.bf16.mxu0 %v3778_v13  ;;  %2339 = vmatprep.subr.bf16.mxu1 %v3781_v14  ;;  %v194_v13 = vsub.s32 3, %v4508_v7 }
  0x9a   :  { %v183_v14 = vrot.slane %v4513_v9, %v4511_v8 }
  0x9c   :  { %2299 = vmatpush1.bf16.msra.mxu0 %v3776_v15  ;;  %2340 = vmatpush1.bf16.msra.mxu1 %v3779_v16  ;;  %v191_v15 = vrot.slane %v4513_v9, %v190_v10  ;;  %v187_v16 = vrot.slane %v4513_v9, %v4517_v11 }
  0x9d   :  { %2300 = vmatprep.subr.bf16.mxu0 %v3784_v17  ;;  %2341 = vmatprep.subr.bf16.mxu1 %v3787_v18  ;;  %v195_v18 = vrot.slane %v4513_v9, %v194_v13 }
  0xa0   :  { %2301 = vmatpush1.bf16.msra.mxu0 %v3782_v19  ;;  %2342 = vmatpush1.bf16.msra.mxu1 %v3785_v20 }
  0xa1   :  { %2302 = vmatprep.subr.bf16.mxu0 %v3790_v21  ;;  %2343 = vmatprep.subr.bf16.mxu1 %v3793_v22 }
  0xa4   :  { %2303 = vmatpush1.bf16.msra.mxu0 %v3788_v12  ;;  %2344 = vmatpush1.bf16.msra.mxu1 %v3791_v23 }
  0xa5   :  { %2304 = vmatprep.subr.bf16.mxu0 %v3796_v24  ;;  %2345 = vmatprep.subr.bf16.mxu1 %v3799_v25 }
  0xa8   :  { %2305 = vmatpush1.bf16.msra.mxu0 %v3794_v26  ;;  %2346 = vmatpush1.bf16.msra.mxu1 %v3797_v27 }
  0xa9   :  { %2306 = vmatprep.subr.bf16.mxu0 %v3802_v28  ;;  %2347 = vmatprep.subr.bf16.mxu1 %v3805_v29 }
  0xac   :  { %2307 = vmatpush1.bf16.msra.mxu0 %v3800_v30  ;;  %2348 = vmatpush1.bf16.msra.mxu1 %v3803_v31 }
  0xad   :  { %2308 = vmatprep.subr.bf16.mxu0 %v3808_v32  ;;  %2349 = vmatprep.subr.bf16.mxu1 %v3811_v33 }
  0xb0   :  { %2309 = vmatpush1.bf16.msra.mxu0 %v3806_v34  ;;  %2350 = vmatpush1.bf16.msra.mxu1 %v3809_v35 }
  0xb1   :  { %2310 = vmatprep.subr.bf16.mxu0 %v3814_v36  ;;  %2351 = vmatprep.subr.bf16.mxu1 %v3817_v37 }
  0xb4   :  { %2311 = vmatpush2.bf16.msra.mxu0 %v3812_v38  ;;  %2352 = vmatpush2.bf16.msra.mxu1 %v3815_v39  ;;  %v3860_v38 = vld [vmem:[#allocation8 + $0x4e0] ss:$16 sps:$4 sm:$0xff]  }
  0xb5   :  { %2312 = vmatprep.subr.bf16.mxu0 %v3820_v40  ;;  %2353 = vmatprep.subr.bf16.mxu1 %v3823_v41  ;;  %v3863_v41 = vld [vmem:[#allocation8 + $0x6e0] ss:$16 sps:$4 sm:$0xff]  }
  0xb8   :  { %2313 = vmatpush2.bf16.msra.mxu0 %v3818_v0  ;;  %2354 = vmatpush2.bf16.msra.mxu1 %v3821_v42  ;;  %v3868_v0 = vld [vmem:[#allocation8 + $0x4c4] ss:$16 sps:$4 sm:$0xff]  }
  0xb9   :  { %2314 = vmatprep.subr.bf16.mxu0 %v3826_v43  ;;  %2355 = vmatprep.subr.bf16.mxu1 %v3829_v44  ;;  %v3871_v43 = vld [vmem:[#allocation8 + $0x6c4] ss:$16 sps:$4 sm:$0xff]   ;;  %v3866_v44 = vld [vmem:[#allocation8 + $0x4c0] ss:$16 sps:$4 sm:$0xff]  }
  0xbc   :  { %2315 = vmatpush2.bf16.msra.mxu0 %v3824_v45  ;;  %2356 = vmatpush2.bf16.msra.mxu1 %v3827_v46  ;;  %v3869_v45 = vld [vmem:[#allocation8 + $0x6c0] ss:$16 sps:$4 sm:$0xff]   ;;  %v3874_v46 = vld [vmem:[#allocation8 + $0x4a4] ss:$16 sps:$4 sm:$0xff]  }
  0xbd   :  { %2316 = vmatprep.subr.bf16.mxu0 %v3832_v47  ;;  %2357 = vmatprep.subr.bf16.mxu1 %v3835_v48  ;;  %v3877_v47 = vld [vmem:[#allocation8 + $0x6a4] ss:$16 sps:$4 sm:$0xff]   ;;  %v3872_v48 = vld [vmem:[#allocation8 + $0x4a0] ss:$16 sps:$4 sm:$0xff]  }
  0xc0   :  { %2317 = vmatpush2.bf16.msra.mxu0 %v3830_v49  ;;  %2358 = vmatpush2.bf16.msra.mxu1 %v3833_v50  ;;  %v3875_v49 = vld [vmem:[#allocation8 + $0x6a0] ss:$16 sps:$4 sm:$0xff]   ;;  %v3880_v50 = vld [vmem:[#allocation8 + $0x484] ss:$16 sps:$4 sm:$0xff]  }
  0xc1   :  { %2318 = vmatprep.subr.bf16.mxu0 %v3838_v51  ;;  %2359 = vmatprep.subr.bf16.mxu1 %v3841_v52  ;;  %v3883_v51 = vld [vmem:[#allocation8 + $0x684] ss:$16 sps:$4 sm:$0xff]   ;;  %v3878_v52 = vld [vmem:[#allocation8 + $0x480] ss:$16 sps:$4 sm:$0xff]  }
  0xc4   :  { %2319 = vmatpush2.bf16.msra.mxu0 %v3836_v53  ;;  %2360 = vmatpush2.bf16.msra.mxu1 %v3839_v54  ;;  %v3881_v53 = vld [vmem:[#allocation8 + $0x680] ss:$16 sps:$4 sm:$0xff]   ;;  %v3886_v54 = vld [vmem:[#allocation8 + $0x464] ss:$16 sps:$4 sm:$0xff]  }
  0xc5   :  { %2320 = vmatprep.subr.bf16.mxu0 %v3844_v55  ;;  %2361 = vmatprep.subr.bf16.mxu1 %v3847_v56  ;;  %v3889_v55 = vld [vmem:[#allocation8 + $0x664] ss:$16 sps:$4 sm:$0xff]   ;;  %v3884_v56 = vld [vmem:[#allocation8 + $0x460] ss:$16 sps:$4 sm:$0xff]  }
  0xc8   :  { %2321 = vmatpush2.bf16.msra.mxu0 %v3842_v57  ;;  %2362 = vmatpush2.bf16.msra.mxu1 %v3845_v58  ;;  %v3887_v57 = vld [vmem:[#allocation8 + $0x660] ss:$16 sps:$4 sm:$0xff]   ;;  %v3892_v58 = vld [vmem:[#allocation8 + $0x444] ss:$16 sps:$4 sm:$0xff]  }
  0xc9   :  { %2322 = vmatprep.subr.bf16.mxu0 %v3850_v59  ;;  %2363 = vmatprep.subr.bf16.mxu1 %v3853_v60  ;;  %v3895_v59 = vld [vmem:[#allocation8 + $0x644] ss:$16 sps:$4 sm:$0xff]   ;;  %v202_v60 = vsub.s32 5, %v4508_v7 }
  0xcc   :  { %2323 = vmatpush2.bf16.msra.mxu0 %v3848_v61  ;;  %2364 = vmatpush2.bf16.msra.mxu1 %v3851_v62  ;;  %v3890_v61 = vld [vmem:[#allocation8 + $0x440] ss:$16 sps:$4 sm:$0xff]   ;;  %v210_v62 = vsub.s32 7, %v4508_v7 }
  0xcd   :  { %2324 = vmatprep.subr.bf16.mxu0 %v3856_v63  ;;  %2365 = vmatprep.subr.bf16.mxu1 %v3859_v1  ;;  %v3893_v63 = vld [vmem:[#allocation8 + $0x640] ss:$16 sps:$4 sm:$0xff]   ;;  %v3898_v1 = vld [vmem:[#allocation8 + $0x424] ss:$16 sps:$4 sm:$0xff]  }
  0xce   :  { %v211_v6 = vrot.slane %v4513_v9, %v210_v62  ;;  %v3938_v62 = vld [vmem:[#allocation8 + $0x540] ss:$16 sps:$4 sm:$0xff]  }
  0xd0   :  { %2325 = vmatpush2.bf16.msra.mxu0 %v3854_v2  ;;  %2366 = vmatpush2.bf16.msra.mxu1 %v3857_v3  ;;  %v3901_v2 = vld [vmem:[#allocation8 + $0x624] ss:$16 sps:$4 sm:$0xff]   ;;  %v203_v3 = vrot.slane %v4513_v9, %v202_v60 }
  0xd1   :  { %2376 = vmatprep.subr.bf16.mxu0 %v3862_v4  ;;  %2417 = vmatprep.subr.bf16.mxu1 %v3865_v5  ;;  %v3896_v4 = vld [vmem:[#allocation8 + $0x420] ss:$16 sps:$4 sm:$0xff]   ;;  %v3943_v60 = vld [vmem:[#allocation8 + $0x744] ss:$16 sps:$4 sm:$0xff]  }
 0x133   :  { %v574_v17 = vpop.f32.mrf.mxu0  ;;  %v615_v20 = vpop.f32.mrf.mxu1 }
 0x134   :  { %v575_v19 = vadd.f32 %v574_v17, %v183_v14  ;;  %v616_v21 = vadd.f32 %v615_v20, %v191_v15  ;;  %v3899_v14 = vld [vmem:[#allocation8 + $0x620] ss:$16 sps:$4 sm:$0xff]   ;;  %v3904_v15 = vld [vmem:[#allocation8 + $0x404] ss:$16 sps:$4 sm:$0xff]  }
 0x135   :  { %v576_v22 = vpop.f32.mrf.mxu0  ;;  %v617_v24 = vpop.f32.mrf.mxu1  ;;  %v3907_v17 = vld [vmem:[#allocation8 + $0x604] ss:$16 sps:$4 sm:$0xff]  }
 0x136   :  { %vm704_vm0 = vcmp.gt.f32.partialorder %v575_v19, 0.0  ;;  %v712_v12 = vmul.f32 0.2, %v575_v19  ;;  %v577_v23 = vadd.f32 %v576_v22, %v187_v16  ;;  %vm706_vm1 = vcmp.gt.f32.partialorder %v616_v21, 0.0  ;;  %v3905_v22 = vld [vmem:[#allocation8 + $0x600] ss:$16 sps:$4 sm:$0xff]  }
 0x137   :  { %v714_v25 = vmul.f32 0.2, %v616_v21  ;;  %v618_v26 = vadd.f32 %v617_v24, %v195_v18  ;;  %v578_v27 = vpop.f32.mrf.mxu0  ;;  %v619_v29 = vpop.f32.mrf.mxu1  ;;  %v3910_v24 = vld [vmem:[#allocation8 + $0x5e4] ss:$16 sps:$4 sm:$0xff]  }
 0x138   :  { %vm705_vm2 = vcmp.gt.f32.partialorder %v577_v23, 0.0  ;;  %v713_v28 = vmul.f32 0.2, %v577_v23  ;;  %v720_v30 = vsel %vm704_vm0, %v575_v19, %v712_v12  ;;  %v3913_v27 = vld [vmem:[#allocation8 + $0x7e4] ss:$16 sps:$4 sm:$0xff]  }
 0x139   :  { %vm707_vm3 = vcmp.gt.f32.partialorder %v618_v26, 0.0  ;;  %v715_v31 = vmul.f32 0.2, %v618_v26  ;;  %v579_v32 = vpop.f32.mrf.mxu0  ;;  %v722_v33 = vsel %vm706_vm1, %v616_v21, %v714_v25  ;;  %v620_v34 = vpop.f32.mrf.mxu1  ;;  %v4532_v39 = vpack.c.bf16 %v720_v30, %v720_v30  ;;  %v3902_v21 = vld [vmem:[#allocation8 + $0x400] ss:$16 sps:$4 sm:$0xff]  }
 0x13a   :  { %v721_v35 = vsel %vm705_vm2, %v577_v23, %v713_v28  ;;  %v4536_v42 = vpack.c.bf16 %v722_v33, %v722_v33  ;;  %v3908_v32 = vld [vmem:[#allocation8 + $0x5e0] ss:$16 sps:$4 sm:$0xff]  }
 0x13b   :  { %v4530_v36 = vpack.c.bf16 %v721_v35, %v721_v35  ;;  %v723_v37 = vsel %vm707_vm3, %v618_v26, %v715_v31  ;;  %v3911_v35 = vld [vmem:[#allocation8 + $0x7e0] ss:$16 sps:$4 sm:$0xff]  }
 0x13c   :  { %v4534_v40 = vpack.c.bf16 %v723_v37, %v723_v37  ;;  %v3916_v37 = vld [vmem:[#allocation8 + $0x5c4] ss:$16 sps:$4 sm:$0xff]  }
 0x13d   :  { %2326 = vmatprep.mubr.bf16.mxu0 %v4530_v36 }
 0x13e   :  { %2367 = vmatprep.mubr.bf16.mxu1 %v4534_v40  ;;  %2327 = vmatmul.mubr.bf16.vlgmr.msra.gmra.mxu0 %v4532_v39 }
 0x13f   :  { %2368 = vmatmul.mubr.bf16.vlgmr.msra.gmra.mxu1 %v4536_v42  ;;  %2377 = vmatpush1.bf16.msra.mxu0 %v3860_v38 }
 0x140   :  { %2418 = vmatpush1.bf16.msra.mxu1 %v3863_v41  ;;  %2378 = vmatprep.subr.bf16.mxu0 %v3868_v0  ;;  %v3919_v41 = vld [vmem:[#allocation8 + $0x7c4] ss:$16 sps:$4 sm:$0xff]   ;;  %v3914_v0 = vld [vmem:[#allocation8 + $0x5c0] ss:$16 sps:$4 sm:$0xff]  }
 0x141   :  { %2419 = vmatprep.subr.bf16.mxu1 %v3871_v43  ;;  %v3917_v43 = vld [vmem:[#allocation8 + $0x7c0] ss:$16 sps:$4 sm:$0xff]  }
 0x143   :  { %2379 = vmatpush1.bf16.msra.mxu0 %v3866_v44  ;;  %v3922_v44 = vld [vmem:[#allocation8 + $0x5a4] ss:$16 sps:$4 sm:$0xff]  }
 0x144   :  { %2420 = vmatpush1.bf16.msra.mxu1 %v3869_v45  ;;  %2380 = vmatprep.subr.bf16.mxu0 %v3874_v46  ;;  %v3925_v45 = vld [vmem:[#allocation8 + $0x7a4] ss:$16 sps:$4 sm:$0xff]   ;;  %v3920_v46 = vld [vmem:[#allocation8 + $0x5a0] ss:$16 sps:$4 sm:$0xff]  }
 0x145   :  { %2421 = vmatprep.subr.bf16.mxu1 %v3877_v47  ;;  %v3923_v47 = vld [vmem:[#allocation8 + $0x7a0] ss:$16 sps:$4 sm:$0xff]  }
 0x147   :  { %2381 = vmatpush1.bf16.msra.mxu0 %v3872_v48  ;;  %v3928_v48 = vld [vmem:[#allocation8 + $0x584] ss:$16 sps:$4 sm:$0xff]  }
 0x148   :  { %2422 = vmatpush1.bf16.msra.mxu1 %v3875_v49  ;;  %2382 = vmatprep.subr.bf16.mxu0 %v3880_v50  ;;  %v3931_v49 = vld [vmem:[#allocation8 + $0x784] ss:$16 sps:$4 sm:$0xff]   ;;  %v3926_v50 = vld [vmem:[#allocation8 + $0x580] ss:$16 sps:$4 sm:$0xff]  }
 0x149   :  { %2423 = vmatprep.subr.bf16.mxu1 %v3883_v51  ;;  %v3929_v51 = vld [vmem:[#allocation8 + $0x780] ss:$16 sps:$4 sm:$0xff]  }
 0x14b   :  { %2383 = vmatpush1.bf16.msra.mxu0 %v3878_v52  ;;  %v3934_v52 = vld [vmem:[#allocation8 + $0x564] ss:$16 sps:$4 sm:$0xff]  }
 0x14c   :  { %2424 = vmatpush1.bf16.msra.mxu1 %v3881_v53  ;;  %2384 = vmatprep.subr.bf16.mxu0 %v3886_v54  ;;  %v198_v53 = vsub.s32 4, %v4508_v7  ;;  %v3937_v54 = vld [vmem:[#allocation8 + $0x764] ss:$16 sps:$4 sm:$0xff]  }
 0x14d   :  { %2425 = vmatprep.subr.bf16.mxu1 %v3889_v55  ;;  %v206_v55 = vsub.s32 6, %v4508_v7 }
 0x14f   :  { %2385 = vmatpush1.bf16.msra.mxu0 %v3884_v56  ;;  %v3932_v56 = vld [vmem:[#allocation8 + $0x560] ss:$16 sps:$4 sm:$0xff]  }
 0x150   :  { %2426 = vmatpush1.bf16.msra.mxu1 %v3887_v57  ;;  %2386 = vmatprep.subr.bf16.mxu0 %v3892_v58  ;;  %v3935_v57 = vld [vmem:[#allocation8 + $0x760] ss:$16 sps:$4 sm:$0xff]   ;;  %v3940_v58 = vld [vmem:[#allocation8 + $0x544] ss:$16 sps:$4 sm:$0xff]  }
 0x151   :  { %2427 = vmatprep.subr.bf16.mxu1 %v3895_v59  ;;  %v199_v59 = vrot.slane %v4513_v9, %v198_v53  ;;  %v4000_v53 = vld [vmem:[#allocation8 + $0xc] ss:$16 sps:$4 sm:$0xff]  }
 0x153   :  { %2387 = vmatpush1.bf16.msra.mxu0 %v3890_v61  ;;  %v4545_v5 = vpop.f32.mrf.mxu0  ;;  %v4548_v16 = vpop.f32.mrf.mxu1  ;;  %v207_v61 = vrot.slane %v4513_v9, %v206_v55  ;;  %v3955_v9 = vld [vmem:[#allocation8 + $0x704] ss:$16 sps:$4 sm:$0xff]   ;;  %v3998_v55 = vld [vmem:[#allocation8 + $0x8] ss:$16 sps:$4 sm:$0xff]  }
 0x154   :  { %2428 = vmatpush1.bf16.msra.mxu1 %v3893_v63  ;;  %2388 = vmatprep.subr.bf16.mxu0 %v3898_v1  ;;  %v3941_v63 = vld [vmem:[#allocation8 + $0x740] ss:$16 sps:$4 sm:$0xff]   ;;  %v3946_v1 = vld [vmem:[#allocation8 + $0x524] ss:$16 sps:$4 sm:$0xff]  }
 0x155   :  { %2429 = vmatprep.subr.bf16.mxu1 %v3901_v2  ;;  %v658_v18 = vpop.f32.mrf.mxu0  ;;  %v699_v20 = vpop.f32.mrf.mxu1  ;;  %v657_v2 = vadd.f32 %v4545_v5, %v199_v59  ;;  %v3953_v5 = vld [vmem:[#allocation8 + $0x700] ss:$16 sps:$4 sm:$0xff]   ;;  %v4004_v59 = vld [vmem:[#allocation8 + $0x1e8] ss:$16 sps:$4 sm:$0xff]  }
 0x156   :  { %v659_v19 = vadd.f32 %v658_v18, %v203_v3  ;;  %v700_v23 = vadd.f32 %v699_v20, %v211_v6  ;;  %v3949_v3 = vld [vmem:[#allocation8 + $0x724] ss:$16 sps:$4 sm:$0xff]   ;;  %v3944_v6 = vld [vmem:[#allocation8 + $0x520] ss:$16 sps:$4 sm:$0xff]   ;;  %v3958_v20 = vld [vmem:[#allocation8 + $0xec] ss:$16 sps:$4 sm:$0xff]  }
 0x157   :  { %2389 = vmatpush1.bf16.msra.mxu0 %v3896_v4  ;;  %v660_v12 = vpop.f32.mrf.mxu0  ;;  %v701_v26 = vpop.f32.mrf.mxu1  ;;  %v698_v4 = vadd.f32 %v4548_v16, %v207_v61  ;;  %vm708_vm6 = vcmp.gt.f32.partialorder %v657_v2, 0.0  ;;  %v3961_v16 = vld [vmem:[#allocation8 + $0x2ec] ss:$16 sps:$4 sm:$0xff]  }
 0x158   :  { %2430 = vmatpush1.bf16.msra.mxu1 %v3899_v14  ;;  %2390 = vmatprep.subr.bf16.mxu0 %v3904_v15  ;;  %vm709_vm4 = vcmp.gt.f32.partialorder %v659_v19, 0.0  ;;  %v717_v25 = vmul.f32 0.2, %v659_v19  ;;  %vm711_vm5 = vcmp.gt.f32.partialorder %v700_v23, 0.0  ;;  %v719_v28 = vmul.f32 0.2, %v700_v23 }
 0x159   :  { %2431 = vmatprep.subr.bf16.mxu1 %v3907_v17  ;;  %v661_v29 = vpop.f32.mrf.mxu0  ;;  %v702_v30 = vpop.f32.mrf.mxu1  ;;  %v3947_v14 = vld [vmem:[#allocation8 + $0x720] ss:$16 sps:$4 sm:$0xff]   ;;  %v3952_v15 = vld [vmem:[#allocation8 + $0x504] ss:$16 sps:$4 sm:$0xff]   ;;  %v716_v17 = vmul.f32 0.2, %v657_v2 }
 0x15a   :  { %v725_v31 = vsel %vm709_vm4, %v659_v19, %v717_v25  ;;  %v727_v34 = vsel %vm711_vm5, %v700_v23, %v719_v28  ;;  %v718_v18 = vmul.f32 0.2, %v698_v4  ;;  %vm710_vm7 = vcmp.gt.f32.partialorder %v698_v4, 0.0  ;;  %v3950_v19 = vld [vmem:[#allocation8 + $0x500] ss:$16 sps:$4 sm:$0xff]  }
 0x15b   :  { %2391 = vmatpush1.bf16.msra.mxu0 %v3902_v21  ;;  %v4550_v33 = vpack.c.bf16 %v725_v31, %v725_v31  ;;  %v4552_v38 = vpack.c.bf16 %v727_v34, %v727_v34  ;;  %v724_v21 = vsel %vm708_vm6, %v657_v2, %v716_v17  ;;  %v3956_v12 = vld [vmem:[#allocation8 + $0xe8] ss:$16 sps:$4 sm:$0xff]   ;;  %v3964_v26 = vld [vmem:[#allocation8 + $0xcc] ss:$16 sps:$4 sm:$0xff]  }
 0x15c   :  { %2432 = vmatpush1.bf16.msra.mxu1 %v3905_v22  ;;  %2392 = vmatprep.subr.bf16.mxu0 %v3910_v24  ;;  %v726_v22 = vsel %vm710_vm7, %v698_v4, %v718_v18  ;;  %v4562_v23 = vpack.c.bf16 %v724_v21, %v724_v21  ;;  %v3959_v24 = vld [vmem:[#allocation8 + $0x2e8] ss:$16 sps:$4 sm:$0xff]   ;;  %v3970_v30 = vld [vmem:[#allocation8 + $0xac] ss:$16 sps:$4 sm:$0xff]  }
 0x15d   :  { %2433 = vmatprep.subr.bf16.mxu1 %v3913_v27  ;;  %2408 = vmatprep.mubr.bf16.mxu0 %v4550_v33  ;;  %v4564_v25 = vpack.c.bf16 %v726_v22, %v726_v22  ;;  %v3967_v27 = vld [vmem:[#allocation8 + $0x2cc] ss:$16 sps:$4 sm:$0xff]   ;;  %v3962_v28 = vld [vmem:[#allocation8 + $0xc8] ss:$16 sps:$4 sm:$0xff]  }
 0x15e   :  { %2449 = vmatprep.mubr.bf16.mxu1 %v4552_v38  ;;  %v3965_v29 = vld [vmem:[#allocation8 + $0x2c8] ss:$16 sps:$4 sm:$0xff]   ;;  %v3973_v31 = vld [vmem:[#allocation8 + $0x2ac] ss:$16 sps:$4 sm:$0xff]  }
 0x15f   :  { %2393 = vmatpush2.bf16.msra.mxu0 %v3908_v32  ;;  %v3968_v32 = vld [vmem:[#allocation8 + $0xa8] ss:$16 sps:$4 sm:$0xff]   ;;  %v4012_v61 = vld [vmem:[#allocation8 + $0x1cc] ss:$16 sps:$4 sm:$0xff]  }
 0x160   :  { %2434 = vmatpush2.bf16.msra.mxu1 %v3911_v35  ;;  %2394 = vmatprep.subr.bf16.mxu0 %v3916_v37  ;;  %v3971_v34 = vld [vmem:[#allocation8 + $0x2a8] ss:$16 sps:$4 sm:$0xff]   ;;  %v3976_v35 = vld [vmem:[#allocation8 + $0x8c] ss:$16 sps:$4 sm:$0xff]  }
 0x161   :  { %2435 = vmatprep.subr.bf16.mxu1 %v3919_v41  ;;  %v3979_v37 = vld [vmem:[#allocation8 + $0x28c] ss:$16 sps:$4 sm:$0xff]   ;;  %v3974_v41 = vld [vmem:[#allocation8 + $0x88] ss:$16 sps:$4 sm:$0xff]  }
 0x162   :  { %v4018_v2 = vld [vmem:[#allocation8 + $0x1ac] ss:$16 sps:$4 sm:$0xff]   ;;  %v4016_v4 = vld [vmem:[#allocation8 + $0x1a8] ss:$16 sps:$4 sm:$0xff]  }
 0x163   :  { %2395 = vmatpush2.bf16.msra.mxu0 %v3914_v0  ;;  %v3982_v0 = vld [vmem:[#allocation8 + $0x6c] ss:$16 sps:$4 sm:$0xff]   ;;  %v4022_v17 = vld [vmem:[#allocation8 + $0x188] ss:$16 sps:$4 sm:$0xff]  }
 0x164   :  { %2436 = vmatpush2.bf16.msra.mxu1 %v3917_v43  ;;  %2396 = vmatprep.subr.bf16.mxu0 %v3922_v44  ;;  %v3985_v43 = vld [vmem:[#allocation8 + $0x26c] ss:$16 sps:$4 sm:$0xff]   ;;  %v3983_v44 = vld [vmem:[#allocation8 + $0x268] ss:$16 sps:$4 sm:$0xff]  }
 0x165   :  { %2437 = vmatprep.subr.bf16.mxu1 %v3925_v45  ;;  %v3988_v45 = vld [vmem:[#allocation8 + $0x4c] ss:$16 sps:$4 sm:$0xff]   ;;  %v4034_v22 = vld [vmem:[#allocation8 + $0x148] ss:$16 sps:$4 sm:$0xff]  }
 0x166   :  { %v4030_v18 = vld [vmem:[#allocation8 + $0x16c] ss:$16 sps:$4 sm:$0xff]  }
 0x167   :  { %2397 = vmatpush2.bf16.msra.mxu0 %v3920_v46  ;;  %v3991_v46 = vld [vmem:[#allocation8 + $0x24c] ss:$16 sps:$4 sm:$0xff]  }
 0x168   :  { %2438 = vmatpush2.bf16.msra.mxu1 %v3923_v47  ;;  %2398 = vmatprep.subr.bf16.mxu0 %v3928_v48  ;;  %v3986_v47 = vld [vmem:[#allocation8 + $0x48] ss:$16 sps:$4 sm:$0xff]   ;;  %v4036_v21 = vld [vmem:[#allocation8 + $0x14c] ss:$16 sps:$4 sm:$0xff]  }
 0x169   :  { %2439 = vmatprep.subr.bf16.mxu1 %v3931_v49  ;;  %v3989_v48 = vld [vmem:[#allocation8 + $0x248] ss:$16 sps:$4 sm:$0xff]   ;;  %v3994_v49 = vld [vmem:[#allocation8 + $0x2c] ss:$16 sps:$4 sm:$0xff]  }
 0x16b   :  { %2399 = vmatpush2.bf16.msra.mxu0 %v3926_v50  ;;  %v3997_v50 = vld [vmem:[#allocation8 + $0x22c] ss:$16 sps:$4 sm:$0xff]  }
 0x16c   :  { %2440 = vmatpush2.bf16.msra.mxu1 %v3929_v51  ;;  %2400 = vmatprep.subr.bf16.mxu0 %v3934_v52  ;;  %v3992_v51 = vld [vmem:[#allocation8 + $0x28] ss:$16 sps:$4 sm:$0xff]  }
 0x16d   :  { %2441 = vmatprep.subr.bf16.mxu1 %v3937_v54  ;;  %v3995_v52 = vld [vmem:[#allocation8 + $0x228] ss:$16 sps:$4 sm:$0xff]   ;;  %v4003_v54 = vld [vmem:[#allocation8 + $0x20c] ss:$16 sps:$4 sm:$0xff]  }
 0x16f   :  { %2401 = vmatpush2.bf16.msra.mxu0 %v3932_v56  ;;  %v4001_v56 = vld [vmem:[#allocation8 + $0x208] ss:$16 sps:$4 sm:$0xff]  }
 0x170   :  { %2442 = vmatpush2.bf16.msra.mxu1 %v3935_v57  ;;  %2402 = vmatprep.subr.bf16.mxu0 %v3940_v58  ;;  %v4006_v57 = vld [vmem:[#allocation8 + $0x1ec] ss:$16 sps:$4 sm:$0xff]  }
 0x171   :  { %2443 = vmatprep.subr.bf16.mxu1 %v3943_v60  ;;  %v4009_v58 = vld [vmem:[#allocation8 + $0x3ec] ss:$16 sps:$4 sm:$0xff]   ;;  %v4007_v60 = vld [vmem:[#allocation8 + $0x3e8] ss:$16 sps:$4 sm:$0xff]  }
 0x173   :  { %2403 = vmatpush2.bf16.msra.mxu0 %v3938_v62  ;;  %v4015_v62 = vld [vmem:[#allocation8 + $0x3cc] ss:$16 sps:$4 sm:$0xff]  }
 0x174   :  { %2444 = vmatpush2.bf16.msra.mxu1 %v3941_v63  ;;  %2404 = vmatprep.subr.bf16.mxu0 %v3946_v1  ;;  %v4010_v63 = vld [vmem:[#allocation8 + $0x1c8] ss:$16 sps:$4 sm:$0xff]  }
 0x175   :  { %2445 = vmatprep.subr.bf16.mxu1 %v3949_v3  ;;  %v4013_v1 = vld [vmem:[#allocation8 + $0x3c8] ss:$16 sps:$4 sm:$0xff]   ;;  %v4021_v3 = vld [vmem:[#allocation8 + $0x3ac] ss:$16 sps:$4 sm:$0xff]  }
 0x177   :  { %2405 = vmatpush2.bf16.msra.mxu0 %v3944_v6  ;;  %v4019_v6 = vld [vmem:[#allocation8 + $0x3a8] ss:$16 sps:$4 sm:$0xff]  }
 0x178   :  { %2446 = vmatpush2.bf16.msra.mxu1 %v3947_v14  ;;  %2406 = vmatprep.subr.bf16.mxu0 %v3952_v15  ;;  %v4024_v14 = vld [vmem:[#allocation8 + $0x18c] ss:$16 sps:$4 sm:$0xff]  }
 0x179   :  { %2447 = vmatprep.subr.bf16.mxu1 %v3955_v9  ;;  %v4027_v15 = vld [vmem:[#allocation8 + $0x38c] ss:$16 sps:$4 sm:$0xff]   ;;  %v4025_v9 = vld [vmem:[#allocation8 + $0x388] ss:$16 sps:$4 sm:$0xff]  }
 0x17b   :  { %2407 = vmatpush2.bf16.msra.mxu0 %v3950_v19  ;;  %v4033_v19 = vld [vmem:[#allocation8 + $0x36c] ss:$16 sps:$4 sm:$0xff]  }
 0x17c   :  { %2448 = vmatpush2.bf16.msra.mxu1 %v3953_v5  ;;  %2458 = vmatprep.subr.bf16.mxu0 %v3958_v20  ;;  %v4028_v5 = vld [vmem:[#allocation8 + $0x168] ss:$16 sps:$4 sm:$0xff]  }
 0x17d   :  { %2499 = vmatprep.subr.bf16.mxu1 %v3961_v16  ;;  %v4031_v20 = vld [vmem:[#allocation8 + $0x368] ss:$16 sps:$4 sm:$0xff]   ;;  %v4039_v16 = vld [vmem:[#allocation8 + $0x34c] ss:$16 sps:$4 sm:$0xff]  }
 0x17e   :  { %2409 = vmatmul.mubr.bf16.vlgmr.msra.gmra.mxu0 %v4562_v23 }
 0x17f   :  { %2450 = vmatmul.mubr.bf16.vlgmr.msra.gmra.mxu1 %v4564_v25  ;;  %2459 = vmatpush1.bf16.msra.mxu0 %v3956_v12  ;;  %v4037_v12 = vld [vmem:[#allocation8 + $0x348] ss:$16 sps:$4 sm:$0xff]  }
 0x180   :  { %2490 = vmatprep.mubr.bf16.mxu0 %v4530_v36  ;;  %2500 = vmatpush1.bf16.msra.mxu1 %v3959_v24  ;;  %v3977_v36 = vld [vmem:[#allocation8 + $0x288] ss:$16 sps:$4 sm:$0xff]   ;;  %v4042_v24 = vld [vmem:[#allocation8 + $0x12c] ss:$16 sps:$4 sm:$0xff]  }
 0x181   :  { %2531 = vmatprep.mubr.bf16.mxu1 %v4534_v40  ;;  %2460 = vmatprep.subr.bf16.mxu0 %v3964_v26  ;;  %v3980_v40 = vld [vmem:[#allocation8 + $0x68] ss:$16 sps:$4 sm:$0xff]   ;;  %v4045_v26 = vld [vmem:[#allocation8 + $0x32c] ss:$16 sps:$4 sm:$0xff]  }
 0x182   :  { %2501 = vmatprep.subr.bf16.mxu1 %v3967_v27  ;;  %v4040_v27 = vld [vmem:[#allocation8 + $0x128] ss:$16 sps:$4 sm:$0xff]  }
 0x183   :  { %2461 = vmatpush1.bf16.msra.mxu0 %v3962_v28  ;;  %v4043_v28 = vld [vmem:[#allocation8 + $0x328] ss:$16 sps:$4 sm:$0xff]  }
 0x184   :  { %2502 = vmatpush1.bf16.msra.mxu1 %v3965_v29  ;;  %2462 = vmatprep.subr.bf16.mxu0 %v3970_v30  ;;  %v4048_v29 = vld [vmem:[#allocation8 + $0x10c] ss:$16 sps:$4 sm:$0xff]  }
 0x185   :  { %2503 = vmatprep.subr.bf16.mxu1 %v3973_v31  ;;  %v4051_v30 = vld [vmem:[#allocation8 + $0x30c] ss:$16 sps:$4 sm:$0xff]   ;;  %v4046_v31 = vld [vmem:[#allocation8 + $0x108] ss:$16 sps:$4 sm:$0xff]  }
 0x187   :  { %2463 = vmatpush1.bf16.msra.mxu0 %v3968_v32  ;;  %v4049_v32 = vld [vmem:[#allocation8 + $0x308] ss:$16 sps:$4 sm:$0xff]  }
 0x188   :  { %2504 = vmatpush1.bf16.msra.mxu1 %v3971_v34  ;;  %2464 = vmatprep.subr.bf16.mxu0 %v3976_v35  ;;  %v4054_v34 = vld [vmem:[#allocation8 + $0x4ec] ss:$16 sps:$4 sm:$0xff]  }
 0x189   :  { %2505 = vmatprep.subr.bf16.mxu1 %v3979_v37  ;;  %v4057_v35 = vld [vmem:[#allocation8 + $0x6ec] ss:$16 sps:$4 sm:$0xff]   ;;  %v4052_v37 = vld [vmem:[#allocation8 + $0x4e8] ss:$16 sps:$4 sm:$0xff]  }
 0x18b   :  { %2465 = vmatpush1.bf16.msra.mxu0 %v3974_v41  ;;  %v4055_v41 = vld [vmem:[#allocation8 + $0x6e8] ss:$16 sps:$4 sm:$0xff]  }
 0x18c   :  { %2506 = vmatpush1.bf16.msra.mxu1 %v3977_v36  ;;  %2466 = vmatprep.subr.bf16.mxu0 %v3982_v0  ;;  %v4060_v36 = vld [vmem:[#allocation8 + $0x4cc] ss:$16 sps:$4 sm:$0xff]  }
 0x18d   :  { %2507 = vmatprep.subr.bf16.mxu1 %v3985_v43  ;;  %v4063_v0 = vld [vmem:[#allocation8 + $0x6cc] ss:$16 sps:$4 sm:$0xff]   ;;  %v4058_v43 = vld [vmem:[#allocation8 + $0x4c8] ss:$16 sps:$4 sm:$0xff]  }
 0x18f   :  { %2467 = vmatpush1.bf16.msra.mxu0 %v3980_v40  ;;  %v4061_v40 = vld [vmem:[#allocation8 + $0x6c8] ss:$16 sps:$4 sm:$0xff]  }
 0x190   :  { %2508 = vmatpush1.bf16.msra.mxu1 %v3983_v44  ;;  %2468 = vmatprep.subr.bf16.mxu0 %v3988_v45  ;;  %v4066_v44 = vld [vmem:[#allocation8 + $0x4ac] ss:$16 sps:$4 sm:$0xff]  }
 0x191   :  { %2509 = vmatprep.subr.bf16.mxu1 %v3991_v46  ;;  %v4069_v45 = vld [vmem:[#allocation8 + $0x6ac] ss:$16 sps:$4 sm:$0xff]   ;;  %v4064_v46 = vld [vmem:[#allocation8 + $0x4a8] ss:$16 sps:$4 sm:$0xff]  }
 0x193   :  { %2469 = vmatpush1.bf16.msra.mxu0 %v3986_v47  ;;  %v4072_v47 = vld [vmem:[#allocation8 + $0x48c] ss:$16 sps:$4 sm:$0xff]  }
 0x194   :  { %2510 = vmatpush1.bf16.msra.mxu1 %v3989_v48  ;;  %2470 = vmatprep.subr.bf16.mxu0 %v3994_v49  ;;  %v4070_v48 = vld [vmem:[#allocation8 + $0x488] ss:$16 sps:$4 sm:$0xff]   ;;  %v4078_v49 = vld [vmem:[#allocation8 + $0x46c] ss:$16 sps:$4 sm:$0xff]  }
 0x195   :  { %2511 = vmatprep.subr.bf16.mxu1 %v3997_v50  ;;  %v4081_v50 = vld [vmem:[#allocation8 + $0x66c] ss:$16 sps:$4 sm:$0xff]  }
 0x197   :  { %2471 = vmatpush1.bf16.msra.mxu0 %v3992_v51  ;;  %v4079_v51 = vld [vmem:[#allocation8 + $0x668] ss:$16 sps:$4 sm:$0xff]  }
 0x198   :  { %2512 = vmatpush1.bf16.msra.mxu1 %v3995_v52  ;;  %2472 = vmatprep.subr.bf16.mxu0 %v4000_v53  ;;  %v4084_v52 = vld [vmem:[#allocation8 + $0x44c] ss:$16 sps:$4 sm:$0xff]  }
 0x199   :  { %2513 = vmatprep.subr.bf16.mxu1 %v4003_v54  ;;  %v4087_v53 = vld [vmem:[#allocation8 + $0x64c] ss:$16 sps:$4 sm:$0xff]   ;;  %v4082_v54 = vld [vmem:[#allocation8 + $0x448] ss:$16 sps:$4 sm:$0xff]  }
 0x19b   :  { %2473 = vmatpush1.bf16.msra.mxu0 %v3998_v55  ;;  %v4085_v55 = vld [vmem:[#allocation8 + $0x648] ss:$16 sps:$4 sm:$0xff]  }
 0x19c   :  { %2514 = vmatpush1.bf16.msra.mxu1 %v4001_v56  ;;  %2474 = vmatprep.subr.bf16.mxu0 %v4006_v57  ;;  %v4090_v56 = vld [vmem:[#allocation8 + $0x42c] ss:$16 sps:$4 sm:$0xff]  }
 0x19d   :  { %2515 = vmatprep.subr.bf16.mxu1 %v4009_v58  ;;  %v4093_v57 = vld [vmem:[#allocation8 + $0x62c] ss:$16 sps:$4 sm:$0xff]   ;;  %v4088_v58 = vld [vmem:[#allocation8 + $0x428] ss:$16 sps:$4 sm:$0xff]  }
 0x19f   :  { %2475 = vmatpush2.bf16.msra.mxu0 %v4004_v59  ;;  %v4091_v59 = vld [vmem:[#allocation8 + $0x628] ss:$16 sps:$4 sm:$0xff]  }
 0x1a0   :  { %2516 = vmatpush2.bf16.msra.mxu1 %v4007_v60  ;;  %2476 = vmatprep.subr.bf16.mxu0 %v4012_v61  ;;  %v4096_v60 = vld [vmem:[#allocation8 + $0x40c] ss:$16 sps:$4 sm:$0xff]  }
 0x1a1   :  { %2517 = vmatprep.subr.bf16.mxu1 %v4015_v62  ;;  %v4099_v61 = vld [vmem:[#allocation8 + $0x60c] ss:$16 sps:$4 sm:$0xff]   ;;  %v4094_v62 = vld [vmem:[#allocation8 + $0x408] ss:$16 sps:$4 sm:$0xff]  }
 0x1a3   :  { %2477 = vmatpush2.bf16.msra.mxu0 %v4010_v63  ;;  %v4097_v63 = vld [vmem:[#allocation8 + $0x608] ss:$16 sps:$4 sm:$0xff]  }
 0x1a4   :  { %2518 = vmatpush2.bf16.msra.mxu1 %v4013_v1  ;;  %2478 = vmatprep.subr.bf16.mxu0 %v4018_v2  ;;  %v4102_v1 = vld [vmem:[#allocation8 + $0x5ec] ss:$16 sps:$4 sm:$0xff]  }
 0x1a5   :  { %2519 = vmatprep.subr.bf16.mxu1 %v4021_v3  ;;  %v4105_v2 = vld [vmem:[#allocation8 + $0x7ec] ss:$16 sps:$4 sm:$0xff]   ;;  %v4100_v3 = vld [vmem:[#allocation8 + $0x5e8] ss:$16 sps:$4 sm:$0xff]  }
 0x1a7   :  { %2479 = vmatpush2.bf16.msra.mxu0 %v4016_v4  ;;  %v4103_v4 = vld [vmem:[#allocation8 + $0x7e8] ss:$16 sps:$4 sm:$0xff]  }
 0x1a8   :  { %2520 = vmatpush2.bf16.msra.mxu1 %v4019_v6  ;;  %2480 = vmatprep.subr.bf16.mxu0 %v4024_v14  ;;  %v4108_v6 = vld [vmem:[#allocation8 + $0x5cc] ss:$16 sps:$4 sm:$0xff]  }
 0x1a9   :  { %2521 = vmatprep.subr.bf16.mxu1 %v4027_v15  ;;  %v4111_v14 = vld [vmem:[#allocation8 + $0x7cc] ss:$16 sps:$4 sm:$0xff]   ;;  %v4106_v15 = vld [vmem:[#allocation8 + $0x5c8] ss:$16 sps:$4 sm:$0xff]  }
 0x1ab   :  { %2481 = vmatpush2.bf16.msra.mxu0 %v4022_v17  ;;  %v4109_v17 = vld [vmem:[#allocation8 + $0x7c8] ss:$16 sps:$4 sm:$0xff]  }
 0x1ac   :  { %2522 = vmatpush2.bf16.msra.mxu1 %v4025_v9  ;;  %2482 = vmatprep.subr.bf16.mxu0 %v4030_v18  ;;  %v4114_v9 = vld [vmem:[#allocation8 + $0x5ac] ss:$16 sps:$4 sm:$0xff]  }
 0x1ad   :  { %2523 = vmatprep.subr.bf16.mxu1 %v4033_v19  ;;  %v4117_v18 = vld [vmem:[#allocation8 + $0x7ac] ss:$16 sps:$4 sm:$0xff]   ;;  %v4112_v19 = vld [vmem:[#allocation8 + $0x5a8] ss:$16 sps:$4 sm:$0xff]  }
 0x1af   :  { %2483 = vmatpush2.bf16.msra.mxu0 %v4028_v5  ;;  %v4115_v5 = vld [vmem:[#allocation8 + $0x7a8] ss:$16 sps:$4 sm:$0xff]  }
 0x1b0   :  { %2524 = vmatpush2.bf16.msra.mxu1 %v4031_v20  ;;  %2484 = vmatprep.subr.bf16.mxu0 %v4036_v21  ;;  %v4120_v20 = vld [vmem:[#allocation8 + $0x58c] ss:$16 sps:$4 sm:$0xff]  }
 0x1b1   :  { %2525 = vmatprep.subr.bf16.mxu1 %v4039_v16  ;;  %v4123_v21 = vld [vmem:[#allocation8 + $0x78c] ss:$16 sps:$4 sm:$0xff]   ;;  %v4118_v16 = vld [vmem:[#allocation8 + $0x588] ss:$16 sps:$4 sm:$0xff]  }
 0x1b3   :  { %2485 = vmatpush2.bf16.msra.mxu0 %v4034_v22  ;;  %v4121_v22 = vld [vmem:[#allocation8 + $0x788] ss:$16 sps:$4 sm:$0xff]  }
 0x1b4   :  { %2526 = vmatpush2.bf16.msra.mxu1 %v4037_v12  ;;  %2486 = vmatprep.subr.bf16.mxu0 %v4042_v24  ;;  %v4126_v12 = vld [vmem:[#allocation8 + $0x56c] ss:$16 sps:$4 sm:$0xff]  }
 0x1b5   :  { %2527 = vmatprep.subr.bf16.mxu1 %v4045_v26  ;;  %v4129_v24 = vld [vmem:[#allocation8 + $0x76c] ss:$16 sps:$4 sm:$0xff]   ;;  %v4124_v26 = vld [vmem:[#allocation8 + $0x568] ss:$16 sps:$4 sm:$0xff]  }
 0x1b7   :  { %2487 = vmatpush2.bf16.msra.mxu0 %v4040_v27  ;;  %v4127_v27 = vld [vmem:[#allocation8 + $0x768] ss:$16 sps:$4 sm:$0xff]  }
 0x1b8   :  { %2528 = vmatpush2.bf16.msra.mxu1 %v4043_v28  ;;  %2488 = vmatprep.subr.bf16.mxu0 %v4048_v29  ;;  %v4132_v28 = vld [vmem:[#allocation8 + $0x54c] ss:$16 sps:$4 sm:$0xff]  }
 0x1b9   :  { %2529 = vmatprep.subr.bf16.mxu1 %v4051_v30  ;;  %v4135_v29 = vld [vmem:[#allocation8 + $0x74c] ss:$16 sps:$4 sm:$0xff]   ;;  %v4130_v30 = vld [vmem:[#allocation8 + $0x548] ss:$16 sps:$4 sm:$0xff]  }
 0x1bb   :  { %2489 = vmatpush2.bf16.msra.mxu0 %v4046_v31  ;;  %v4133_v31 = vld [vmem:[#allocation8 + $0x748] ss:$16 sps:$4 sm:$0xff]  }
 0x1bc   :  { %2530 = vmatpush2.bf16.msra.mxu1 %v4049_v32  ;;  %2540 = vmatprep.subr.bf16.mxu0 %v4054_v34  ;;  %v4138_v32 = vld [vmem:[#allocation8 + $0x52c] ss:$16 sps:$4 sm:$0xff]  }
 0x1bd   :  { %2581 = vmatprep.subr.bf16.mxu1 %v4057_v35  ;;  %v4141_v34 = vld [vmem:[#allocation8 + $0x72c] ss:$16 sps:$4 sm:$0xff]   ;;  %v4136_v35 = vld [vmem:[#allocation8 + $0x528] ss:$16 sps:$4 sm:$0xff]  }
 0x1be   :  { %2491 = vmatmul.mubr.bf16.vlgmr.msra.gmra.mxu0 %v4532_v39  ;;  %v4067_v39 = vld [vmem:[#allocation8 + $0x6a8] ss:$16 sps:$4 sm:$0xff]  }
 0x1bf   :  { %2532 = vmatmul.mubr.bf16.vlgmr.msra.gmra.mxu1 %v4536_v42  ;;  %2541 = vmatpush1.bf16.msra.mxu0 %v4052_v37  ;;  %v4075_v42 = vld [vmem:[#allocation8 + $0x68c] ss:$16 sps:$4 sm:$0xff]   ;;  %v4139_v37 = vld [vmem:[#allocation8 + $0x728] ss:$16 sps:$4 sm:$0xff]  }
 0x1c0   :  { %2572 = vmatprep.mubr.bf16.mxu0 %v4550_v33  ;;  %2582 = vmatpush1.bf16.msra.mxu1 %v4055_v41  ;;  %v4073_v33 = vld [vmem:[#allocation8 + $0x688] ss:$16 sps:$4 sm:$0xff]   ;;  %v4144_v41 = vld [vmem:[#allocation8 + $0x50c] ss:$16 sps:$4 sm:$0xff]  }
 0x1c1   :  { %2613 = vmatprep.mubr.bf16.mxu1 %v4552_v38  ;;  %2542 = vmatprep.subr.bf16.mxu0 %v4060_v36  ;;  %v4076_v38 = vld [vmem:[#allocation8 + $0x468] ss:$16 sps:$4 sm:$0xff]   ;;  %v4147_v36 = vld [vmem:[#allocation8 + $0x70c] ss:$16 sps:$4 sm:$0xff]  }
 0x1c2   :  { %2583 = vmatprep.subr.bf16.mxu1 %v4063_v0  ;;  %v4142_v0 = vld [vmem:[#allocation8 + $0x508] ss:$16 sps:$4 sm:$0xff]  }
 0x1c3   :  { %2543 = vmatpush1.bf16.msra.mxu0 %v4058_v43  ;;  %v4145_v43 = vld [vmem:[#allocation8 + $0x708] ss:$16 sps:$4 sm:$0xff]  }
 0x1c4   :  { %2584 = vmatpush1.bf16.msra.mxu1 %v4061_v40  ;;  %2544 = vmatprep.subr.bf16.mxu0 %v4066_v44  ;;  %v4150_v40 = vld [vmem:[#allocation10 + $0x74] ss:$8 sps:$4 sm:$0xff]   ;;  %v4148_v44 = vld [vmem:[#allocation10 + $0x70] ss:$8 sps:$4 sm:$0xff]  }
 0x1c5   :  { %2585 = vmatprep.subr.bf16.mxu1 %v4069_v45  ;;  %v4153_v45 = vld [vmem:[#allocation10 + $0x64] ss:$8 sps:$4 sm:$0xff]  }
 0x1c7   :  { %2545 = vmatpush1.bf16.msra.mxu0 %v4064_v46 }
 0x1c8   :  { %2586 = vmatpush1.bf16.msra.mxu1 %v4067_v39  ;;  %2546 = vmatprep.subr.bf16.mxu0 %v4072_v47  ;;  %v4151_v47 = vld [vmem:[#allocation10 + $0x60] ss:$8 sps:$4 sm:$0xff]  }
 0x1c9   :  { %2587 = vmatprep.subr.bf16.mxu1 %v4075_v42 }
 0x1cb   :  { %2547 = vmatpush1.bf16.msra.mxu0 %v4070_v48  ;;  %v4156_v48 = vld [vmem:[#allocation10 + $0x54] ss:$8 sps:$4 sm:$0xff]  }
 0x1cc   :  { %2588 = vmatpush1.bf16.msra.mxu1 %v4073_v33  ;;  %2548 = vmatprep.subr.bf16.mxu0 %v4078_v49 }
 0x1cd   :  { %2589 = vmatprep.subr.bf16.mxu1 %v4081_v50 }
 0x1cf   :  { %2549 = vmatpush1.bf16.msra.mxu0 %v4076_v38  ;;  %v4154_v38 = vld [vmem:[#allocation10 + $0x50] ss:$8 sps:$4 sm:$0xff]  }
 0x1d0   :  { %2590 = vmatpush1.bf16.msra.mxu1 %v4079_v51  ;;  %2550 = vmatprep.subr.bf16.mxu0 %v4084_v52 }
 0x1d1   :  { %2591 = vmatprep.subr.bf16.mxu1 %v4087_v53  ;;  %v4196_v53 = vld [vmem:[#allocation10 + $0x170] ss:$8 sps:$4 sm:$0xff]  }
 0x1d3   :  { %2551 = vmatpush1.bf16.msra.mxu0 %v4082_v54  ;;  %v4201_v54 = vld [vmem:[#allocation10 + $0x164] ss:$8 sps:$4 sm:$0xff]  }
 0x1d4   :  { %2592 = vmatpush1.bf16.msra.mxu1 %v4085_v55  ;;  %2552 = vmatprep.subr.bf16.mxu0 %v4090_v56  ;;  %v4157_v55 = vld [vmem:[#allocation10 + $0x40] ss:$8 sps:$4 sm:$0xff]   ;;  %v4162_v56 = vld [vmem:[#allocation10 + $0x34] ss:$8 sps:$4 sm:$0xff]  }
 0x1d5   :  { %2593 = vmatprep.subr.bf16.mxu1 %v4093_v57  ;;  %v4199_v57 = vld [vmem:[#allocation10 + $0x160] ss:$8 sps:$4 sm:$0xff]  }
 0x1d7   :  { %2553 = vmatpush1.bf16.msra.mxu0 %v4088_v58  ;;  %v4204_v58 = vld [vmem:[#allocation10 + $0x154] ss:$8 sps:$4 sm:$0xff]  }
 0x1d8   :  { %2594 = vmatpush1.bf16.msra.mxu1 %v4091_v59  ;;  %2554 = vmatprep.subr.bf16.mxu0 %v4096_v60  ;;  %v4160_v59 = vld [vmem:[#allocation10 + $0x30] ss:$8 sps:$4 sm:$0xff]   ;;  %v4165_v60 = vld [vmem:[#allocation10 + $0x24] ss:$8 sps:$4 sm:$0xff]  }
 0x1d9   :  { %2595 = vmatprep.subr.bf16.mxu1 %v4099_v61  ;;  %v4202_v61 = vld [vmem:[#allocation10 + $0x150] ss:$8 sps:$4 sm:$0xff]  }
 0x1db   :  { %2555 = vmatpush1.bf16.msra.mxu0 %v4094_v62  ;;  %v4207_v62 = vld [vmem:[#allocation10 + $0x144] ss:$8 sps:$4 sm:$0xff]  }
 0x1dc   :  { %2596 = vmatpush1.bf16.msra.mxu1 %v4097_v63  ;;  %2556 = vmatprep.subr.bf16.mxu0 %v4102_v1  ;;  %v4163_v63 = vld [vmem:[#allocation10 + $0x20] ss:$8 sps:$4 sm:$0xff]   ;;  %v4168_v1 = vld [vmem:[#allocation10 + $0x14] ss:$8 sps:$4 sm:$0xff]  }
 0x1dd   :  { %2597 = vmatprep.subr.bf16.mxu1 %v4105_v2  ;;  %v4205_v2 = vld [vmem:[#allocation10 + $0x140] ss:$8 sps:$4 sm:$0xff]  }
 0x1df   :  { %2557 = vmatpush2.bf16.msra.mxu0 %v4100_v3  ;;  %v4210_v3 = vld [vmem:[#allocation10 + $0x134] ss:$8 sps:$4 sm:$0xff]  }
 0x1e0   :  { %2598 = vmatpush2.bf16.msra.mxu1 %v4103_v4  ;;  %2558 = vmatprep.subr.bf16.mxu0 %v4108_v6  ;;  %v4166_v4 = vld [vmem:[#allocation10 + $0x10] ss:$8 sps:$4 sm:$0xff]   ;;  %v4171_v6 = vld [vmem:[#allocation10 + $0x4] ss:$8 sps:$4 sm:$0xff]  }
 0x1e1   :  { %2599 = vmatprep.subr.bf16.mxu1 %v4111_v14  ;;  %v4208_v14 = vld [vmem:[#allocation10 + $0x130] ss:$8 sps:$4 sm:$0xff]  }
 0x1e3   :  { %2559 = vmatpush2.bf16.msra.mxu0 %v4106_v15  ;;  %v4213_v15 = vld [vmem:[#allocation10 + $0x124] ss:$8 sps:$4 sm:$0xff]  }
 0x1e4   :  { %2600 = vmatpush2.bf16.msra.mxu1 %v4109_v17  ;;  %2560 = vmatprep.subr.bf16.mxu0 %v4114_v9  ;;  %v4169_v17 = vld [vmem:[#allocation10] ss:$8 sps:$4 sm:$0xff]   ;;  %v4174_v9 = vld [vmem:[#allocation10 + $0xf4] ss:$8 sps:$4 sm:$0xff]  }
 0x1e5   :  { %2601 = vmatprep.subr.bf16.mxu1 %v4117_v18  ;;  %v4211_v18 = vld [vmem:[#allocation10 + $0x120] ss:$8 sps:$4 sm:$0xff]  }
 0x1e7   :  { %2561 = vmatpush2.bf16.msra.mxu0 %v4112_v19  ;;  %v4216_v19 = vld [vmem:[#allocation10 + $0x114] ss:$8 sps:$4 sm:$0xff]  }
 0x1e8   :  { %2602 = vmatpush2.bf16.msra.mxu1 %v4115_v5  ;;  %2562 = vmatprep.subr.bf16.mxu0 %v4120_v20  ;;  %v4172_v5 = vld [vmem:[#allocation10 + $0xf0] ss:$8 sps:$4 sm:$0xff]   ;;  %v4177_v20 = vld [vmem:[#allocation10 + $0xe4] ss:$8 sps:$4 sm:$0xff]  }
 0x1e9   :  { %2603 = vmatprep.subr.bf16.mxu1 %v4123_v21  ;;  %v4214_v21 = vld [vmem:[#allocation10 + $0x110] ss:$8 sps:$4 sm:$0xff]  }
 0x1eb   :  { %2563 = vmatpush2.bf16.msra.mxu0 %v4118_v16  ;;  %v4219_v16 = vld [vmem:[#allocation10 + $0x104] ss:$8 sps:$4 sm:$0xff]  }
 0x1ec   :  { %2604 = vmatpush2.bf16.msra.mxu1 %v4121_v22  ;;  %2564 = vmatprep.subr.bf16.mxu0 %v4126_v12  ;;  %v4175_v22 = vld [vmem:[#allocation10 + $0xe0] ss:$8 sps:$4 sm:$0xff]   ;;  %v4180_v12 = vld [vmem:[#allocation10 + $0xd4] ss:$8 sps:$4 sm:$0xff]  }
 0x1ed   :  { %2605 = vmatprep.subr.bf16.mxu1 %v4129_v24  ;;  %v4217_v24 = vld [vmem:[#allocation10 + $0x100] ss:$8 sps:$4 sm:$0xff]  }
 0x1ef   :  { %2565 = vmatpush2.bf16.msra.mxu0 %v4124_v26  ;;  %v4222_v26 = vld [vmem:[#allocation10 + $0x1f4] ss:$8 sps:$4 sm:$0xff]  }
 0x1f0   :  { %2606 = vmatpush2.bf16.msra.mxu1 %v4127_v27  ;;  %2566 = vmatprep.subr.bf16.mxu0 %v4132_v28  ;;  %v4178_v27 = vld [vmem:[#allocation10 + $0xd0] ss:$8 sps:$4 sm:$0xff]   ;;  %v4183_v28 = vld [vmem:[#allocation10 + $0xc4] ss:$8 sps:$4 sm:$0xff]  }
 0x1f1   :  { %2607 = vmatprep.subr.bf16.mxu1 %v4135_v29  ;;  %v4220_v29 = vld [vmem:[#allocation10 + $0x1f0] ss:$8 sps:$4 sm:$0xff]  }
 0x1f3   :  { %2567 = vmatpush2.bf16.msra.mxu0 %v4130_v30  ;;  %v4225_v30 = vld [vmem:[#allocation10 + $0x1e4] ss:$8 sps:$4 sm:$0xff]  }
 0x1f4   :  { %2608 = vmatpush2.bf16.msra.mxu1 %v4133_v31  ;;  %2568 = vmatprep.subr.bf16.mxu0 %v4138_v32  ;;  %v4181_v31 = vld [vmem:[#allocation10 + $0xc0] ss:$8 sps:$4 sm:$0xff]   ;;  %v4186_v32 = vld [vmem:[#allocation10 + $0xb4] ss:$8 sps:$4 sm:$0xff]  }
 0x1f5   :  { %2609 = vmatprep.subr.bf16.mxu1 %v4141_v34  ;;  %v4223_v34 = vld [vmem:[#allocation10 + $0x1e0] ss:$8 sps:$4 sm:$0xff]  }
 0x1f7   :  { %2569 = vmatpush2.bf16.msra.mxu0 %v4136_v35  ;;  %v4228_v35 = vld [vmem:[#allocation10 + $0x1d4] ss:$8 sps:$4 sm:$0xff]  }
 0x1f8   :  { %2610 = vmatpush2.bf16.msra.mxu1 %v4139_v37  ;;  %2570 = vmatprep.subr.bf16.mxu0 %v4144_v41  ;;  %v4184_v37 = vld [vmem:[#allocation10 + $0xb0] ss:$8 sps:$4 sm:$0xff]   ;;  %v4189_v41 = vld [vmem:[#allocation10 + $0xa4] ss:$8 sps:$4 sm:$0xff]  }
 0x1f9   :  { %2611 = vmatprep.subr.bf16.mxu1 %v4147_v36  ;;  %v4226_v36 = vld [vmem:[#allocation10 + $0x1d0] ss:$8 sps:$4 sm:$0xff]  }
 0x1fb   :  { %2571 = vmatpush2.bf16.msra.mxu0 %v4142_v0  ;;  %v4231_v0 = vld [vmem:[#allocation10 + $0x1c4] ss:$8 sps:$4 sm:$0xff]  }
 0x1fc   :  { %2612 = vmatpush2.bf16.msra.mxu1 %v4145_v43  ;;  %3034 = vmatprep.subr.bf16.mxu0 %v4150_v40  ;;  %v4187_v43 = vld [vmem:[#allocation10 + $0xa0] ss:$8 sps:$4 sm:$0xff]   ;;  %v4192_v40 = vld [vmem:[#allocation10 + $0x94] ss:$8 sps:$4 sm:$0xff]  }
 0x1fe   :  { %2573 = vmatmul.mubr.bf16.vlgmr.msra.gmra.mxu0 %v4562_v23  ;;  %v4575_v46 = vpop.f32.mrf.mxu0  ;;  %v4159_v23 = vld [vmem:[#allocation10 + $0x44] ss:$8 sps:$4 sm:$0xff]  }
 0x1ff   :  { %2614 = vmatmul.mubr.bf16.vlgmr.msra.gmra.mxu1 %v4564_v25  ;;  %v4578_v39 = vpop.f32.mrf.mxu1  ;;  %3035 = vmatpush1.bf16.msra.mxu0 %v4148_v44  ;;  %v4198_v25 = vld [vmem:[#allocation10 + $0x174] ss:$8 sps:$4 sm:$0xff]   ;;  %v4229_v44 = vld [vmem:[#allocation10 + $0x1c0] ss:$8 sps:$4 sm:$0xff]  }
 0x200   :  { %v4580_v42 = vpop.f32.mrf.mxu0  ;;  %3036 = vmatprep.subr.bf16.mxu0 %v4153_v45  ;;  %3075 = vmatprep.subr.bf16.mxu1 %v4198_v25  ;;  %v4234_v45 = vld [vmem:[#allocation10 + $0x1b4] ss:$8 sps:$4 sm:$0xff]  }
 0x201   :  { %v4582_v33 = vpop.f32.mrf.mxu1  ;;  %3076 = vmatpush1.bf16.msra.mxu1 %v4196_v53 }
 0x202   :  { %v2332_v49 = vpop.f32.mrf.mxu0  ;;  %3077 = vmatprep.subr.bf16.mxu1 %v4201_v54 }
 0x203   :  { %v2373_v50 = vpop.f32.mrf.mxu1  ;;  %3037 = vmatpush1.bf16.msra.mxu0 %v4151_v47  ;;  %v4587_v47 = vld [vmem:[%s4618_s4] sm:$0xf]  ;;  %v4195_v49 = vld [vmem:[#allocation10 + $0x84] ss:$8 sps:$4 sm:$0xff]  }
 0x204   :  { %v2333_v51 = vpop.f32.mrf.mxu0  ;;  %3038 = vmatprep.subr.bf16.mxu0 %v4156_v48  ;;  %v4190_v48 = vld [vmem:[#allocation10 + $0x90] ss:$8 sps:$4 sm:$0xff]  }
 0x205   :  { %v2374_v52 = vpop.f32.mrf.mxu1  ;;  %3078 = vmatpush1.bf16.msra.mxu1 %v4199_v57  ;;  %v4232_v50 = vld [vmem:[#allocation10 + $0x1b0] ss:$8 sps:$4 sm:$0xff]   ;;  %v1001_v51 = vrot.slane %v4587_v47, %v4517_v11 }
 0x206   :  { %3079 = vmatprep.subr.bf16.mxu1 %v4204_v58  ;;  %v4237_v58 = vld [vmem:[#allocation10 + $0x1a4] ss:$8 sps:$4 sm:$0xff]  }
 0x207   :  { %3039 = vmatpush1.bf16.msra.mxu0 %v4154_v38  ;;  %v997_v38 = vrot.slane %v4587_v47, %v4511_v8  ;;  %v2331_v53 = vadd.f32 %v4580_v42, %v1001_v51 }
 0x208   :  { %3040 = vmatprep.subr.bf16.mxu0 %v4159_v23  ;;  %v4193_v23 = vld [vmem:[#allocation10 + $0x80] ss:$8 sps:$4 sm:$0xff]  }
 0x209   :  { %3080 = vmatpush1.bf16.msra.mxu1 %v4202_v61  ;;  %v2329_v52 = vadd.f32 %v4575_v46, %v997_v38 }
 0x20a   :  { %3081 = vmatprep.subr.bf16.mxu1 %v4207_v62 }
 0x20b   :  { %3041 = vmatpush1.bf16.msra.mxu0 %v4157_v55  ;;  %v2370_v25 = vadd.f32 %v4578_v39, %v2329_v52  ;;  %v2372_v55 = vadd.f32 %v4582_v33, %v2331_v53 }
 0x20c   :  { %3042 = vmatprep.subr.bf16.mxu0 %v4162_v56 }
 0x20d   :  { %3082 = vmatpush1.bf16.msra.mxu1 %v4205_v2 }
 0x20e   :  { %3083 = vmatprep.subr.bf16.mxu1 %v4210_v3  ;;  %v4240_v3 = vld [vmem:[#allocation10 + $0x194] ss:$8 sps:$4 sm:$0xff]  }
 0x20f   :  { %3043 = vmatpush1.bf16.msra.mxu0 %v4160_v59 }
 0x210   :  { %3044 = vmatprep.subr.bf16.mxu0 %v4165_v60  ;;  %v4235_v60 = vld [vmem:[#allocation10 + $0x1a0] ss:$8 sps:$4 sm:$0xff]  }
 0x211   :  { %3084 = vmatpush1.bf16.msra.mxu1 %v4208_v14 }
 0x212   :  { %3085 = vmatprep.subr.bf16.mxu1 %v4213_v15  ;;  %v4241_v15 = vld [vmem:[#allocation10 + $0x180] ss:$8 sps:$4 sm:$0xff]  }
 0x213   :  { %3045 = vmatpush1.bf16.msra.mxu0 %v4163_v63 }
 0x214   :  { %3046 = vmatprep.subr.bf16.mxu0 %v4168_v1 }
 0x215   :  { %3086 = vmatpush1.bf16.msra.mxu1 %v4211_v18 }
 0x216   :  { %3087 = vmatprep.subr.bf16.mxu1 %v4216_v19 }
 0x217   :  { %3047 = vmatpush1.bf16.msra.mxu0 %v4166_v4  ;;  %v4238_v4 = vld [vmem:[#allocation10 + $0x190] ss:$8 sps:$4 sm:$0xff]  }
 0x218   :  { %3048 = vmatprep.subr.bf16.mxu0 %v4171_v6 }
 0x219   :  { %3088 = vmatpush1.bf16.msra.mxu1 %v4214_v21 }
 0x21a   :  { %3089 = vmatprep.subr.bf16.mxu1 %v4219_v16 }
 0x21b   :  { %3049 = vmatpush1.bf16.msra.mxu0 %v4169_v17  ;;  %v4243_v17 = vld [vmem:[#allocation10 + $0x184] ss:$8 sps:$4 sm:$0xff]  }
 0x21c   :  { %3050 = vmatprep.subr.bf16.mxu0 %v4174_v9 }
 0x21d   :  { %3090 = vmatpush1.bf16.msra.mxu1 %v4217_v24 }
 0x21e   :  { %3091 = vmatprep.subr.bf16.mxu1 %v4222_v26 }
 0x21f   :  { %3051 = vmatpush2.bf16.msra.mxu0 %v4172_v5 }
 0x220   :  { %3052 = vmatprep.subr.bf16.mxu0 %v4177_v20 }
 0x221   :  { %3092 = vmatpush2.bf16.msra.mxu1 %v4220_v29  ;;  %v4246_v29 = vld [vmem:[#allocation11 + $0x70] sm:$0xff]  }
 0x222   :  { %3093 = vmatprep.subr.bf16.mxu1 %v4225_v30  ;;  %v4247_v30 = vld [vmem:[#allocation11 + $0x30] sm:$0xff]  }
 0x223   :  { %3053 = vmatpush2.bf16.msra.mxu0 %v4175_v22 }
 0x224   :  { %3054 = vmatprep.subr.bf16.mxu0 %v4180_v12 }
 0x225   :  { %3094 = vmatpush2.bf16.msra.mxu1 %v4223_v34  ;;  %v4250_v34 = vld [vmem:[#allocation11 + $0x60] sm:$0xff]  }
 0x226   :  { %3095 = vmatprep.subr.bf16.mxu1 %v4228_v35  ;;  %v4251_v35 = vld [vmem:[#allocation11 + $0x20] sm:$0xff]  }
 0x227   :  { %3055 = vmatpush2.bf16.msra.mxu0 %v4178_v27  ;;  %v4244_v27 = vld [vmem:[#allocation11 + $0x78] sm:$0xff]  }
 0x228   :  { %3056 = vmatprep.subr.bf16.mxu0 %v4183_v28  ;;  %v4245_v28 = vld [vmem:[#allocation11 + $0x38] sm:$0xff]  }
 0x229   :  { %3096 = vmatpush2.bf16.msra.mxu1 %v4226_v36  ;;  %v4254_v36 = vld [vmem:[#allocation11 + $0x50] sm:$0xff]  }
 0x22a   :  { %3097 = vmatprep.subr.bf16.mxu1 %v4231_v0  ;;  %v1005_v0 = vrot.slane %v4587_v47, %v190_v10 }
 0x22b   :  { %3057 = vmatpush2.bf16.msra.mxu0 %v4181_v31  ;;  %v4248_v31 = vld [vmem:[#allocation11 + $0x68] sm:$0xff]  }
 0x22c   :  { %3058 = vmatprep.subr.bf16.mxu0 %v4186_v32  ;;  %v4249_v32 = vld [vmem:[#allocation11 + $0x28] sm:$0xff]  }
 0x22d   :  { %3098 = vmatpush2.bf16.msra.mxu1 %v4229_v44 }
 0x22e   :  { %3099 = vmatprep.subr.bf16.mxu1 %v4234_v45 }
 0x22f   :  { %3059 = vmatpush2.bf16.msra.mxu0 %v4184_v37  ;;  %v4252_v37 = vld [vmem:[#allocation11 + $0x58] sm:$0xff]  }
 0x230   :  { %3060 = vmatprep.subr.bf16.mxu0 %v4189_v41  ;;  %v4253_v41 = vld [vmem:[#allocation11 + $0x18] sm:$0xff]  }
 0x231   :  { %3100 = vmatpush2.bf16.msra.mxu1 %v4232_v50 }
 0x232   :  { %3101 = vmatprep.subr.bf16.mxu1 %v4237_v58 }
 0x233   :  { %3061 = vmatpush2.bf16.msra.mxu0 %v4187_v43  ;;  %v1009_v43 = vrot.slane %v4587_v47, %v194_v13 }
 0x234   :  { %3062 = vmatprep.subr.bf16.mxu0 %v4192_v40 }
 0x235   :  { %3102 = vmatpush2.bf16.msra.mxu1 %v4235_v60 }
 0x236   :  { %3103 = vmatprep.subr.bf16.mxu1 %v4240_v3  ;;  %v4259_v3 = vld [vmem:[#allocation11] sm:$0xff]  }
 0x237   :  { %3063 = vmatpush2.bf16.msra.mxu0 %v4190_v48 }
 0x238   :  { %3064 = vmatprep.subr.bf16.mxu0 %v4195_v49 }
 0x239   :  { %3104 = vmatpush2.bf16.msra.mxu1 %v4238_v4 }
 0x23a   :  { %3105 = vmatprep.subr.bf16.mxu1 %v4243_v17 }
 0x23b   :  { %3065 = vmatpush2.bf16.msra.mxu0 %v4193_v23 }
 0x23c   :  { %3726 = vmatprep.subr.bf16.mxu0 %v4244_v27 }
 0x23d   :  { %3106 = vmatpush2.bf16.msra.mxu1 %v4241_v15 }
 0x23e   :  { %v2410_v54 = vpop.f32.mrf.mxu0 }
 0x23f   :  { %v2411_v56 = vadd.f32 %v2410_v54, %v2370_v25  ;;  %v2451_v57 = vpop.f32.mrf.mxu1 }
 0x240   :  { %v2412_v59 = vpop.f32.mrf.mxu0 }
 0x241   :  { %v2452_v61 = vadd.f32 %v2451_v57, %v2411_v56  ;;  %v2413_v62 = vadd.f32 %v2412_v59, %v2372_v55  ;;  %v2453_v63 = vpop.f32.mrf.mxu1 }
 0x242   :  { %v2414_v1 = vpop.f32.mrf.mxu0 }
 0x243   :  { %vm2622_vm8 = vcmp.gt.f32.partialorder %v2452_v61, 0.0  ;;  %v2626_v46 = vmul.f32 0.2, %v2452_v61  ;;  %v2454_v42 = vadd.f32 %v2453_v63, %v2413_v62  ;;  %v2455_v2 = vpop.f32.mrf.mxu1  ;;  %v4256_v63 = vld [vmem:[#allocation11 + $0x48] sm:$0xff]  }
 0x244   :  { %v2415_v39 = vpop.f32.mrf.mxu0  ;;  %v4258_v2 = vld [vmem:[#allocation11 + $0x40] sm:$0xff]  }
 0x245   :  { %vm2623_vm9 = vcmp.gt.f32.partialorder %v2454_v42, 0.0  ;;  %v2627_v33 = vmul.f32 0.2, %v2454_v42  ;;  %v2456_v6 = vpop.f32.mrf.mxu1  ;;  %v2630_v14 = vsel %vm2622_vm8, %v2452_v61, %v2626_v46  ;;  %v4255_v61 = vld [vmem:[#allocation11 + $0x10] sm:$0xff]   ;;  %v4257_v46 = vld [vmem:[#allocation11 + $0x8] sm:$0xff]  }
 0x246   :  { %v2634_v19 = vpack.c.bf16 %v2630_v14, %v2630_v14  ;;  %v2702_v39 = vld [vmem:[%s4620_s6] sm:$0x3] }
 0x247   :  { %v2631_v9 = vsel %vm2623_vm9, %v2454_v42, %v2627_v33  ;;  %v2707_v4 = vrot.slane %v2702_v39, %v4511_v8  ;;  %v2711_v33 = vrot.slane %v2702_v39, %v4517_v11  ;;  %v3708_v11 = vld [vmem:[%s4622_s8] ss:$0 sm:$0xff] }
 0x248   :  { %v2635_v18 = vpack.c.bf16 %v2631_v9, %v2631_v9 }
 0x24a   :  { %3066 = vmatprep.mubr.bf16.mxu0 %v2635_v18 }
 0x24b   :  { %3067 = vmatmul.mubr.bf16.vlgmr.msra.gmra.mxu0 %v2634_v19 }
 0x24c   :  { %3727 = vmatpush3.bf16.msra.mxu0 %v4245_v28 }
 0x24d   :  { %3728 = vmatprep.subr.bf16.mxu0 %v4246_v29 }
 0x250   :  { %3729 = vmatpush3.bf16.msra.mxu0 %v4247_v30 }
 0x251   :  { %3730 = vmatprep.subr.bf16.mxu0 %v4248_v31 }
 0x254   :  { %3731 = vmatpush3.bf16.msra.mxu0 %v4249_v32 }
 0x255   :  { %3732 = vmatprep.subr.bf16.mxu0 %v4250_v34 }
 0x258   :  { %3733 = vmatpush3.bf16.msra.mxu0 %v4251_v35 }
 0x259   :  { %3734 = vmatprep.subr.bf16.mxu0 %v4252_v37 }
 0x25c   :  { %3735 = vmatpush3.bf16.msra.mxu0 %v4253_v41 }
 0x25d   :  { %3736 = vmatprep.subr.bf16.mxu0 %v4254_v36 }
 0x260   :  { %3737 = vmatpush3.bf16.msra.mxu0 %v4255_v61 }
 0x261   :  { %3738 = vmatprep.subr.bf16.mxu0 %v4256_v63 }
 0x264   :  { %3739 = vmatpush3.bf16.msra.mxu0 %v4257_v46 }
 0x265   :  { %3740 = vmatprep.subr.bf16.mxu0 %v4258_v2 }
 0x268   :  { %3741 = vmatpush3.bf16.msra.mxu0 %v4259_v3 }
 0x27e   :  { %v2492_v5 = vpop.f32.mrf.mxu0 }
 0x27f   :  { %v2533_v20 = vpop.f32.mrf.mxu1  ;;  %v2493_v40 = vadd.f32 %v2492_v5, %v1005_v0 }
 0x280   :  { %v2494_v21 = vpop.f32.mrf.mxu0 }
 0x281   :  { %v2535_v16 = vpop.f32.mrf.mxu1  ;;  %v2495_v44 = vadd.f32 %v2494_v21, %v1009_v43  ;;  %v2534_v45 = vadd.f32 %v2533_v20, %v2493_v40 }
 0x282   :  { %v2496_v22 = vpop.f32.mrf.mxu0 }
 0x283   :  { %v2537_v12 = vpop.f32.mrf.mxu1  ;;  %v2536_v49 = vadd.f32 %v2535_v16, %v2495_v44 }
 0x284   :  { %v2497_v24 = vpop.f32.mrf.mxu0 }
 0x285   :  { %v2538_v26 = vpop.f32.mrf.mxu1 }
 0x2be   :  { %v2574_v48 = vpop.f32.mrf.mxu0 }
 0x2bf   :  { %v2575_v50 = vadd.f32 %v2574_v48, %v2534_v45  ;;  %v2615_v38 = vpop.f32.mrf.mxu1 }
 0x2c0   :  { %v2576_v51 = vpop.f32.mrf.mxu0 }
 0x2c1   :  { %v2616_v23 = vadd.f32 %v2615_v38, %v2575_v50  ;;  %v2577_v52 = vadd.f32 %v2576_v51, %v2536_v49  ;;  %v2617_v53 = vpop.f32.mrf.mxu1 }
 0x2c2   :  { %v2578_v25 = vpop.f32.mrf.mxu0 }
 0x2c3   :  { %vm2624_vm10 = vcmp.gt.f32.partialorder %v2616_v23, 0.0  ;;  %v2628_v54 = vmul.f32 0.2, %v2616_v23  ;;  %v2618_v55 = vadd.f32 %v2617_v53, %v2577_v52  ;;  %v2619_v10 = vpop.f32.mrf.mxu1 }
 0x2c4   :  { %v2579_v56 = vpop.f32.mrf.mxu0 }
 0x2c5   :  { %vm2625_vm11 = vcmp.gt.f32.partialorder %v2618_v55, 0.0  ;;  %v2629_v7 = vmul.f32 0.2, %v2618_v55  ;;  %v2620_v13 = vpop.f32.mrf.mxu1  ;;  %v2632_v47 = vsel %vm2624_vm10, %v2616_v23, %v2628_v54 }
 0x2c6   :  { %v2636_v59 = vpack.c.bf16 %v2632_v47, %v2632_v47 }
 0x2c7   :  { %v2633_v57 = vsel %vm2625_vm11, %v2618_v55, %v2629_v7 }
 0x2c8   :  { %v2637_v58 = vpack.c.bf16 %v2633_v57, %v2633_v57 }
 0x2ca   :  { %3107 = vmatprep.mubr.bf16.mxu1 %v2637_v58 }
 0x2cb   :  { %3108 = vmatmul.mubr.bf16.vlgmr.msra.gmra.mxu1 %v2636_v59 }
 0x30b   :  { %v3068_v60 = vpop.f32.mrf.mxu0 }
 0x30c   :  { %v3069_v6 = vadd.f32 %v3068_v60, %v2707_v4 }
 0x30d   :  { %v3070_v62 = vpop.f32.mrf.mxu0 }
 0x30e   :  { %v3071_v15 = vadd.f32 %v3070_v62, %v2711_v33 }
 0x30f   :  { %v3072_v1 = vpop.f32.mrf.mxu0 }
 0x311   :  { %v3073_v42 = vpop.f32.mrf.mxu0 }
 0x38b   :  { %v3109_v14 = vpop.f32.mrf.mxu1 }
 0x38c   :  { %v3110_v17 = vadd.f32 %v3109_v14, %v3069_v6 }
 0x38d   :  { %v3111_v9 = vpop.f32.mrf.mxu1 }
 0x38e   :  { %vm3116_vm12 = vcmp.gt.f32.partialorder %v3110_v17, 0.0  ;;  %v3118_v18 = vmul.f32 0.2, %v3110_v17  ;;  %v3112_v19 = vadd.f32 %v3111_v9, %v3071_v15 }
 0x38f   :  { %v3113_v5 = vpop.f32.mrf.mxu1 }
 0x390   :  { %vm3117_vm13 = vcmp.gt.f32.partialorder %v3112_v19, 0.0  ;;  %v3119_v20 = vmul.f32 0.2, %v3112_v19  ;;  %v3120_v21 = vsel %vm3116_vm12, %v3110_v17, %v3118_v18 }
 0x391   :  { %v3114_v16 = vpop.f32.mrf.mxu1  ;;  %v3122_v24 = vpack.c.bf16 %v3120_v21, %v3120_v21 }
 0x392   :  { %v3121_v22 = vsel %vm3117_vm13, %v3112_v19, %v3119_v20 }
 0x393   :  { %v3123_v12 = vpack.c.bf16 %v3121_v22, %v3121_v22 }
 0x395   :  { %3291 = vmatprep.mubr.bf16.mxu0 %v3123_v12 }
 0x396   :  { %3292 = vmatmul.mubr.bf16.vlgmr.msra.gmra.mxu0 %v3122_v24 }
 0x456   :  { %v3742_v8 = vpop.f32.mrf.mxu0 }
 0x458   :  { %v3743_v26 = vpop.f32.mrf.mxu0 }
 0x459   :  { %v3744_v27 = vadd.f32 %v3743_v26, %v3742_v8 }
 0x45a   :  { %v3745_v28 = vpop.f32.mrf.mxu0 }
 0x45b   :  { %v3294_v29 = vadd.f32 %v3744_v27, %v3708_v11 }
 0x45c   :  { %v3746_v30 = vpop.f32.mrf.mxu0 }
 0x45d   :  { %v3725_v31 = vmul.f32 -1.442695, %v3294_v29 }
 0x45f   :  { %4260 = vpow2.f32 %v3725_v31 }
 0x46c   :  { %v4261_v32 = vpop.eup %4260 }
 0x46d   :  { %v3302_v34 = vadd.f32 1.0, %v4261_v32 }
 0x46f   :  { %4262 = vrcp.f32 %v3302_v34 }
 0x47c   :  { %v4263_v35 = vpop.eup %4262 }
 0x47d   :  { %3305 = vst [vmem:[#allocation13] sm:$0xff] %v4263_v35 }
 0x47e   :  { %4395 = shalt.err (!%p4392_p6)
}
 0x47f   :  { %3315 = dma.vmem_to_hbm [thread:$0]  %s3313_s25, 128, %s4623_s9, [#allocation4]  }
 0x480   :  { %4412 = dma.done.wait [#allocation4], 128  }
 0x481   :  { %4413 = vsyncadd [#allocation4], 4294967168 }
 0x482   :  { %3319 = vsyncpa [#allocation3], 1 }
 0x483   :  { %3320 = vsyncpa [#allocation6], 1 }
 0x484   :  { %3321 = vsyncpa [#allocation9], 1 }
 0x485   :  { %3322 = vsyncpa [#allocation12], 1 }
 0x486   :  { %3323 = vsyncpa [#allocation4], 1 }

</bundles_post_ra>
